<compile_context>
chip_gen: v7x
topology: tpu7x:2x2x1
jax: 0.10.0
libtpu: 0.0.40
codegen_flags: <defaults>
</compile_context>

<pallas_src>
import functools

import jax
import jax.numpy as jnp
from jax import lax
from jax.experimental import pallas as pl
from jax.experimental.pallas import tpu as pltpu

KSIZE = 3
POOL = 2
N_CLASSES = 10
NEG_SLOPE = 0.01          # nn.LeakyReLU default
CLASS_PAD = 128           # lane-dense logits / output
NEG_BIG = -1e30           # padded-class bias -> exp() underflows to 0


# ---------------------------------------------------------------------------
# Fused Pallas kernel: conv1 + pool1 + conv2 + pool2 + linear + softmax
# ---------------------------------------------------------------------------
def _convnet_kernel(p1_ref, w1bd_ref, b1_ref, w2_ref, b2_ref, wfc_ref, bfc_ref,
                    out_ref, *, nb, hp1, wp1, hp2, wp2, c1, neg_slope):
    """One batch block of the whole ConvNet forward.

    p1_ref  : (nb*hp1*wp1, 36)      bf16  pool-grouped im2col patches of the input
    w1bd_ref: (36, 4*c1)            bf16  block-diagonal conv1 weight (4 pool candidates)
    b1_ref  : (1, c1)               f32
    w2_ref  : (9, c1, c2)           bf16  conv2 weight, one (c1, c2) slab per tap
    b2_ref  : (1, c2)               f32
    wfc_ref : (hp2*wp2, c2, 128)    bf16  fc weight per pooled spatial position
    bfc_ref : (1, 128)              f32   fc bias, padded classes = -1e30
    out_ref : (nb, 128)             f32   softmax probabilities (padded classes ~ 0)
    """
    # --- conv1: single block-diagonal matmul; maxpool = max over the 4 lane blocks ----
    z1 = jnp.dot(p1_ref[...], w1bd_ref[...],
                 preferred_element_type=jnp.float32)            # (nb*hp1*wp1, 4*c1)
    pooled1 = z1[:, 0:c1]
    for j in range(1, POOL * POOL):
        pooled1 = jnp.maximum(pooled1, z1[:, j * c1:(j + 1) * c1])
    t1 = pooled1 + b1_ref[...]                                  # bias hoisted after pool
    y1 = jnp.maximum(t1, neg_slope * t1)                        # (nb*hp1*wp1, c1) f32

    # --- conv2: 9 shifted accumulating matmuls over the flat (n, h, w) row index ------
    # Row p = n*hp1*wp1 + i*wp1 + j of acc2 holds raw conv2 at spatial (i, j) of sample n
    # (rows with j >= wp1-2 etc. are garbage and never read).  No im2col is materialized.
    ho2, wo2 = hp1 - (KSIZE - 1), wp1 - (KSIZE - 1)
    p_rows = (nb - 1) * hp1 * wp1 + (ho2 - 1) * wp1 + wo2
    acc2 = None
    for kh in range(KSIZE):
        for kw in range(KSIZE):
            off = kh * wp1 + kw
            lhs = y1[off:off + p_rows, :].astype(w2_ref.dtype)
            part = jnp.dot(lhs, w2_ref[kh * KSIZE + kw],
                           preferred_element_type=jnp.float32)
            acc2 = part if acc2 is None else acc2 + part        # (p_rows, c2) f32

    # --- pool2 + bias + LeakyReLU + linear (per pooled position) + softmax ------------
    for n in range(nb):
        logit = None
        for ii in range(hp2):
            for jj in range(wp2):
                base = n * hp1 * wp1 + (POOL * ii) * wp1 + POOL * jj
                v = jnp.maximum(
                    jnp.maximum(acc2[base:base + 1, :],
                                acc2[base + 1:base + 2, :]),
                    jnp.maximum(acc2[base + wp1:base + wp1 + 1, :],
                                acc2[base + wp1 + 1:base + wp1 + 2, :]))   # (1, c2)
                t2 = v + b2_ref[...]
                a2 = jnp.maximum(t2, neg_slope * t2).astype(wfc_ref.dtype)
                part = jnp.dot(a2, wfc_ref[ii * wp2 + jj],
                               preferred_element_type=jnp.float32)         # (1, 128)
                logit = part if logit is None else logit + part
        logit = logit + bfc_ref[...]                            # padded classes -> -1e30
        m = jnp.max(logit, axis=-1, keepdims=True)
        e = jnp.exp(logit - m)
        out_ref[n:n + 1, :] = e / jnp.sum(e, axis=-1, keepdims=True)


# ---------------------------------------------------------------------------
# Wrapper-side glue (cheap XLA ops: patch extraction + one-time weight prep)
# ---------------------------------------------------------------------------
def _pool_grouped_patches(x_nhw, hp, wp):
    """(N, H, W) single-channel input -> (N*hp*wp, 4*9) pool-grouped im2col patches.

    Column order = (pool candidate dy*2+dx) * 9 + (kh*3 + kw); row order = (n, hp, wp).
    """
    cols = []
    for dy in range(POOL):
        for dx in range(POOL):
            for kh in range(KSIZE):
                for kw in range(KSIZE):
                    cols.append(x_nhw[:, dy + kh: dy + kh + POOL * hp: POOL,
                                      dx + kw: dx + kw + POOL * wp: POOL])
    p = jnp.stack(cols, axis=-1)                                # (N, hp, wp, 36)
    return p.reshape(x_nhw.shape[0] * hp * wp, POOL * POOL * KSIZE * KSIZE)


def _prepare_weights(params, hp2, wp2):
    c1 = params["conv1_w"].shape[0]
    c2 = params["conv2_w"].shape[0]
    n_classes = params["fc_w"].shape[0]
    assert n_classes <= CLASS_PAD

    # conv1 -> block-diagonal (36, 4*c1): one (9, c1) block per pooling candidate.
    w1mat = jnp.transpose(params["conv1_w"], (2, 3, 1, 0)).reshape(KSIZE * KSIZE, c1)
    w1bd = jnp.kron(jnp.eye(POOL * POOL, dtype=w1mat.dtype), w1mat)

    # conv2 -> one (c1, c2) slab per tap, tap order (kh, kw).
    w2t = jnp.transpose(params["conv2_w"], (2, 3, 1, 0)).reshape(KSIZE * KSIZE, c1, c2)

    # fc -> per pooled spatial position (matches torch NCHW flatten order),
    # classes zero-padded to 128 lanes; padded bias = -1e30 so softmax ignores them.
    wfc = params["fc_w"].reshape(n_classes, c2, hp2, wp2)
    wfc = jnp.transpose(wfc, (2, 3, 1, 0)).reshape(hp2 * wp2, c2, n_classes)
    wfc = jnp.pad(wfc, ((0, 0), (0, 0), (0, CLASS_PAD - n_classes)))
    bfc = jnp.full((1, CLASS_PAD), NEG_BIG, jnp.float32)
    bfc = bfc.at[0, :n_classes].set(params["fc_b"].astype(jnp.float32))

    return (w1bd.astype(jnp.bfloat16),
            params["conv1_b"].reshape(1, c1).astype(jnp.float32),
            w2t.astype(jnp.bfloat16),
            params["conv2_b"].reshape(1, c2).astype(jnp.float32),
            wfc.astype(jnp.bfloat16),
            bfc)


def convnet_forward(x_nchw, params):
    n, cin, h, w = x_nchw.shape
    assert cin == 1, "ConvNet expects single-channel input"
    hp1, wp1 = (h - KSIZE + 1) // POOL, (w - KSIZE + 1) // POOL
    hp2, wp2 = (hp1 - KSIZE + 1) // POOL, (wp1 - KSIZE + 1) // POOL
    assert hp2 >= 1 and wp2 >= 1, "input spatial size too small"
    c1 = params["conv1_w"].shape[0]
    c2 = params["conv2_w"].shape[0]
    n_classes = params["fc_w"].shape[0]

    # Batch blocking: block rows must be a multiple of 8 sublanes unless == full batch.
    block_n = n if (n <= 8 or n % 8 != 0) else 8
    grid = (n // block_n,)

    x_nhw = x_nchw[:, 0, :, :].astype(jnp.float32)
    p1 = _pool_grouped_patches(x_nhw, hp1, wp1).astype(jnp.bfloat16)
    w1bd, b1, w2t, b2, wfc, bfc = _prepare_weights(params, hp2, wp2)

    k1 = POOL * POOL * KSIZE * KSIZE            # 36
    m_blk = block_n * hp1 * wp1

    kernel = functools.partial(
        _convnet_kernel, nb=block_n, hp1=hp1, wp1=wp1, hp2=hp2, wp2=wp2,
        c1=c1, neg_slope=NEG_SLOPE)

    probs = pl.pallas_call(
        kernel,
        out_shape=jax.ShapeDtypeStruct((n, CLASS_PAD), jnp.float32),
        grid_spec=pltpu.PrefetchScalarGridSpec(
            num_scalar_prefetch=0,
            grid=grid,
            in_specs=[
                pl.BlockSpec((m_blk, k1), lambda b: (b, 0)),                  # patches
                pl.BlockSpec((k1, POOL * POOL * c1), lambda b: (0, 0)),       # w1 blockdiag
                pl.BlockSpec((1, c1), lambda b: (0, 0)),                      # b1
                pl.BlockSpec((KSIZE * KSIZE, c1, c2), lambda b: (0, 0, 0)),   # w2 taps
                pl.BlockSpec((1, c2), lambda b: (0, 0)),                      # b2
                pl.BlockSpec((hp2 * wp2, c2, CLASS_PAD), lambda b: (0, 0, 0)),  # fc w
                pl.BlockSpec((1, CLASS_PAD), lambda b: (0, 0)),               # fc b
            ],
            out_specs=pl.BlockSpec((block_n, CLASS_PAD), lambda b: (b, 0)),
        ),
        compiler_params=pltpu.CompilerParams(
            dimension_semantics=("parallel",)),
    )(p1, w1bd, b1, w2t, b2, wfc, bfc)

    # TODO(synk): Dropout(0.5) is eval-mode identity; training-mode parity would need
    #             pltpu.prng_seed/prng_random_bits masking with 1/(1-p) scaling.
    return probs[:, :n_classes]


# ---------------------------------------------------------------------------
# Pure-JAX reference (for correctness checking) and parameter init
# ---------------------------------------------------------------------------
def _reference_forward(x_nchw, params):
    def conv_block(x, wgt, b):
        y = lax.conv_general_dilated(x, wgt, (1, 1), "VALID",
                                     dimension_numbers=("NCHW", "OIHW", "NCHW"))
        y = y + b[None, :, None, None]
        y = jnp.where(y >= 0, y, NEG_SLOPE * y)
        n, c, hh, ww = y.shape
        hp, wp = hh // POOL, ww // POOL
        y = y[:, :, :hp * POOL, :wp * POOL]
        return y.reshape(n, c, hp, POOL, wp, POOL).max(axis=(3, 5))

    y = conv_block(x_nchw.astype(jnp.float32), params["conv1_w"], params["conv1_b"])
    y = conv_block(y, params["conv2_w"], params["conv2_b"])
    feat = y.reshape(y.shape[0], -1)                       # torch NCHW flatten order
    logits = feat @ params["fc_w"].T + params["fc_b"]
    return jax.nn.softmax(logits, axis=-1)


def init_params(key, in_features):
    k1, k2, k3, k4, k5, k6 = jax.random.split(key, 6)
    return {
        "conv1_w": 0.1 * jax.random.normal(k1, (32, 1, KSIZE, KSIZE), jnp.float32),
        "conv1_b": 0.1 * jax.random.normal(k2, (32,), jnp.float32),
        "conv2_w": 0.05 * jax.random.normal(k3, (64, 32, KSIZE, KSIZE), jnp.float32),
        "conv2_b": 0.1 * jax.random.normal(k4, (64,), jnp.float32),
        "fc_w": 0.05 * jax.random.normal(k5, (N_CLASSES, in_features), jnp.float32),
        "fc_b": 0.1 * jax.random.normal(k6, (N_CLASSES,), jnp.float32),
    }


if __name__ == "__main__":
    key = jax.random.PRNGKey(0)
    kx, kp = jax.random.split(key)

    # N=2, Cin=1, 16x16:  16 -> conv(3) 14 -> pool 7 -> conv(3) 5 -> pool 2  => 64*2*2=256
    x = jax.random.normal(kx, (2, 1, 16, 16), jnp.float32)
    params = init_params(kp, in_features=64 * 2 * 2)

    out = jax.block_until_ready(jax.jit(convnet_forward)(x, params))

    assert out.shape == (2, N_CLASSES), out.shape
    assert jnp.allclose(jnp.sum(out, axis=-1), 1.0, atol=1e-5)

    ref = _reference_forward(x, params)
    err = float(jnp.max(jnp.abs(out - ref)))
    assert err < 2e-2, f"mismatch vs pure-JAX reference: {err}"

    print("KERNEL_OK")
</pallas_src>

<mosaic_0001>
module attributes {stable_mosaic.version = 11 : i64} {
  func.func @_convnet_kernel(%arg0: i32, %arg1: memref<98x36xbf16, #tpu.memory_space<vmem>>, %arg2: memref<36x128xbf16, #tpu.memory_space<vmem>>, %arg3: memref<1x32xf32, #tpu.memory_space<vmem>>, %arg4: memref<9x32x64xbf16, #tpu.memory_space<vmem>>, %arg5: memref<1x64xf32, #tpu.memory_space<vmem>>, %arg6: memref<4x64x128xbf16, #tpu.memory_space<vmem>>, %arg7: memref<1x128xf32, #tpu.memory_space<vmem>>, %arg8: memref<2x128xf32, #tpu.memory_space<vmem>>) attributes {dimension_semantics = [#tpu.dimension_semantics<parallel>], iteration_bounds = array<i64: 1>, scalar_prefetch = 0 : i64, scratch_operands = 0 : i64, tpu.core_type = #tpu.core_type<tc>, window_params = [{transform_indices = @transform_0, window_bounds = array<i64: 98, 36>}, {pipeline_mode = #tpu.pipeline_mode<synchronous>, transform_indices = @transform_1, window_bounds = array<i64: 36, 128>}, {pipeline_mode = #tpu.pipeline_mode<synchronous>, transform_indices = @transform_2, window_bounds = array<i64: 1, 32>}, {pipeline_mode = #tpu.pipeline_mode<synchronous>, transform_indices = @transform_3, window_bounds = array<i64: 9, 32, 64>}, {pipeline_mode = #tpu.pipeline_mode<synchronous>, transform_indices = @transform_4, window_bounds = array<i64: 1, 64>}, {pipeline_mode = #tpu.pipeline_mode<synchronous>, transform_indices = @transform_5, window_bounds = array<i64: 4, 64, 128>}, {pipeline_mode = #tpu.pipeline_mode<synchronous>, transform_indices = @transform_6, window_bounds = array<i64: 1, 128>}, {transform_indices = @transform_7, window_bounds = array<i64: 2, 128>}]} {
    %c0 = arith.constant 0 : index
    %c0_0 = arith.constant 0 : index
    %0 = vector.load %arg1[%c0, %c0_0] : memref<98x36xbf16, #tpu.memory_space<vmem>>, vector<98x36xbf16>
    %c0_1 = arith.constant 0 : index
    %c0_2 = arith.constant 0 : index
    %1 = vector.load %arg2[%c0_1, %c0_2] : memref<36x128xbf16, #tpu.memory_space<vmem>>, vector<36x128xbf16>
    %cst = arith.constant dense<0.000000e+00> : vector<98x128xf32>
    %2 = tpu.matmul %0, %1, %cst {dimension_numbers = #tpu.dot_dimension_numbers<[1], [0], [0], [1], [0, 0, 1, 1], [], []>} : vector<98x36xbf16>, vector<36x128xbf16>, vector<98x128xf32> -> vector<98x128xf32>
    %3 = vector.extract_strided_slice %2 {offsets = [0, 0], sizes = [98, 32], strides = [1, 1]} : vector<98x128xf32> to vector<98x32xf32>
    %4 = vector.extract_strided_slice %2 {offsets = [0, 32], sizes = [98, 32], strides = [1, 1]} : vector<98x128xf32> to vector<98x32xf32>
    %5 = arith.maximumf %3, %4 : vector<98x32xf32>
    %6 = vector.extract_strided_slice %2 {offsets = [0, 64], sizes = [98, 32], strides = [1, 1]} : vector<98x128xf32> to vector<98x32xf32>
    %7 = arith.maximumf %5, %6 : vector<98x32xf32>
    %8 = vector.extract_strided_slice %2 {offsets = [0, 96], sizes = [98, 32], strides = [1, 1]} : vector<98x128xf32> to vector<98x32xf32>
    %9 = arith.maximumf %7, %8 : vector<98x32xf32>
    %c0_3 = arith.constant 0 : index
    %c0_4 = arith.constant 0 : index
    %10 = vector.load %arg3[%c0_3, %c0_4] : memref<1x32xf32, #tpu.memory_space<vmem>>, vector<1x32xf32>
    %11 = vector.broadcast %10 : vector<1x32xf32> to vector<98x32xf32>
    %12 = arith.addf %9, %11 : vector<98x32xf32>
    %cst_5 = arith.constant 0.00999999977 : f32
    %13 = vector.broadcast %cst_5 : f32 to vector<98x32xf32>
    %14 = arith.mulf %13, %12 : vector<98x32xf32>
    %15 = arith.maximumf %12, %14 : vector<98x32xf32>
    %16 = vector.extract_strided_slice %15 {offsets = [0, 0], sizes = [82, 32], strides = [1, 1]} : vector<98x32xf32> to vector<82x32xf32>
    %17 = arith.truncf %16 : vector<82x32xf32> to vector<82x32xbf16>
    %c0_6 = arith.constant 0 : index
    %c0_7 = arith.constant 0 : index
    %c0_8 = arith.constant 0 : index
    %18 = vector.load %arg4[%c0_6, %c0_7, %c0_8] : memref<9x32x64xbf16, #tpu.memory_space<vmem>>, vector<1x32x64xbf16>
    %19 = vector.shape_cast %18 : vector<1x32x64xbf16> to vector<32x64xbf16>
    %cst_9 = arith.constant dense<0.000000e+00> : vector<82x64xf32>
    %20 = tpu.matmul %17, %19, %cst_9 {dimension_numbers = #tpu.dot_dimension_numbers<[1], [0], [0], [1], [0, 0, 1, 1], [], []>} : vector<82x32xbf16>, vector<32x64xbf16>, vector<82x64xf32> -> vector<82x64xf32>
    %21 = vector.extract_strided_slice %15 {offsets = [1, 0], sizes = [82, 32], strides = [1, 1]} : vector<98x32xf32> to vector<82x32xf32>
    %22 = arith.truncf %21 : vector<82x32xf32> to vector<82x32xbf16>
    %c1 = arith.constant 1 : index
    %c0_10 = arith.constant 0 : index
    %c0_11 = arith.constant 0 : index
    %23 = vector.load %arg4[%c1, %c0_10, %c0_11] : memref<9x32x64xbf16, #tpu.memory_space<vmem>>, vector<1x32x64xbf16>
    %24 = vector.shape_cast %23 : vector<1x32x64xbf16> to vector<32x64xbf16>
    %cst_12 = arith.constant dense<0.000000e+00> : vector<82x64xf32>
    %25 = tpu.matmul %22, %24, %cst_12 {dimension_numbers = #tpu.dot_dimension_numbers<[1], [0], [0], [1], [0, 0, 1, 1], [], []>} : vector<82x32xbf16>, vector<32x64xbf16>, vector<82x64xf32> -> vector<82x64xf32>
    %26 = arith.addf %20, %25 : vector<82x64xf32>
    %27 = vector.extract_strided_slice %15 {offsets = [2, 0], sizes = [82, 32], strides = [1, 1]} : vector<98x32xf32> to vector<82x32xf32>
    %28 = arith.truncf %27 : vector<82x32xf32> to vector<82x32xbf16>
    %c2 = arith.constant 2 : index
    %c0_13 = arith.constant 0 : index
    %c0_14 = arith.constant 0 : index
    %29 = vector.load %arg4[%c2, %c0_13, %c0_14] : memref<9x32x64xbf16, #tpu.memory_space<vmem>>, vector<1x32x64xbf16>
    %30 = vector.shape_cast %29 : vector<1x32x64xbf16> to vector<32x64xbf16>
    %cst_15 = arith.constant dense<0.000000e+00> : vector<82x64xf32>
    %31 = tpu.matmul %28, %30, %cst_15 {dimension_numbers = #tpu.dot_dimension_numbers<[1], [0], [0], [1], [0, 0, 1, 1], [], []>} : vector<82x32xbf16>, vector<32x64xbf16>, vector<82x64xf32> -> vector<82x64xf32>
    %32 = arith.addf %26, %31 : vector<82x64xf32>
    %33 = vector.extract_strided_slice %15 {offsets = [7, 0], sizes = [82, 32], strides = [1, 1]} : vector<98x32xf32> to vector<82x32xf32>
    %34 = arith.truncf %33 : vector<82x32xf32> to vector<82x32xbf16>
    %c3 = arith.constant 3 : index
    %c0_16 = arith.constant 0 : index
    %c0_17 = arith.constant 0 : index
    %35 = vector.load %arg4[%c3, %c0_16, %c0_17] : memref<9x32x64xbf16, #tpu.memory_space<vmem>>, vector<1x32x64xbf16>
    %36 = vector.shape_cast %35 : vector<1x32x64xbf16> to vector<32x64xbf16>
    %cst_18 = arith.constant dense<0.000000e+00> : vector<82x64xf32>
    %37 = tpu.matmul %34, %36, %cst_18 {dimension_numbers = #tpu.dot_dimension_numbers<[1], [0], [0], [1], [0, 0, 1, 1], [], []>} : vector<82x32xbf16>, vector<32x64xbf16>, vector<82x64xf32> -> vector<82x64xf32>
    %38 = arith.addf %32, %37 : vector<82x64xf32>
    %39 = vector.extract_strided_slice %15 {offsets = [8, 0], sizes = [82, 32], strides = [1, 1]} : vector<98x32xf32> to vector<82x32xf32>
    %40 = arith.truncf %39 : vector<82x32xf32> to vector<82x32xbf16>
    %c4 = arith.constant 4 : index
    %c0_19 = arith.constant 0 : index
    %c0_20 = arith.constant 0 : index
    %41 = vector.load %arg4[%c4, %c0_19, %c0_20] : memref<9x32x64xbf16, #tpu.memory_space<vmem>>, vector<1x32x64xbf16>
    %42 = vector.shape_cast %41 : vector<1x32x64xbf16> to vector<32x64xbf16>
    %cst_21 = arith.constant dense<0.000000e+00> : vector<82x64xf32>
    %43 = tpu.matmul %40, %42, %cst_21 {dimension_numbers = #tpu.dot_dimension_numbers<[1], [0], [0], [1], [0, 0, 1, 1], [], []>} : vector<82x32xbf16>, vector<32x64xbf16>, vector<82x64xf32> -> vector<82x64xf32>
    %44 = arith.addf %38, %43 : vector<82x64xf32>
    %45 = vector.extract_strided_slice %15 {offsets = [9, 0], sizes = [82, 32], strides = [1, 1]} : vector<98x32xf32> to vector<82x32xf32>
    %46 = arith.truncf %45 : vector<82x32xf32> to vector<82x32xbf16>
    %c5 = arith.constant 5 : index
    %c0_22 = arith.constant 0 : index
    %c0_23 = arith.constant 0 : index
    %47 = vector.load %arg4[%c5, %c0_22, %c0_23] : memref<9x32x64xbf16, #tpu.memory_space<vmem>>, vector<1x32x64xbf16>
    %48 = vector.shape_cast %47 : vector<1x32x64xbf16> to vector<32x64xbf16>
    %cst_24 = arith.constant dense<0.000000e+00> : vector<82x64xf32>
    %49 = tpu.matmul %46, %48, %cst_24 {dimension_numbers = #tpu.dot_dimension_numbers<[1], [0], [0], [1], [0, 0, 1, 1], [], []>} : vector<82x32xbf16>, vector<32x64xbf16>, vector<82x64xf32> -> vector<82x64xf32>
    %50 = arith.addf %44, %49 : vector<82x64xf32>
    %51 = vector.extract_strided_slice %15 {offsets = [14, 0], sizes = [82, 32], strides = [1, 1]} : vector<98x32xf32> to vector<82x32xf32>
    %52 = arith.truncf %51 : vector<82x32xf32> to vector<82x32xbf16>
    %c6 = arith.constant 6 : index
    %c0_25 = arith.constant 0 : index
    %c0_26 = arith.constant 0 : index
    %53 = vector.load %arg4[%c6, %c0_25, %c0_26] : memref<9x32x64xbf16, #tpu.memory_space<vmem>>, vector<1x32x64xbf16>
    %54 = vector.shape_cast %53 : vector<1x32x64xbf16> to vector<32x64xbf16>
    %cst_27 = arith.constant dense<0.000000e+00> : vector<82x64xf32>
    %55 = tpu.matmul %52, %54, %cst_27 {dimension_numbers = #tpu.dot_dimension_numbers<[1], [0], [0], [1], [0, 0, 1, 1], [], []>} : vector<82x32xbf16>, vector<32x64xbf16>, vector<82x64xf32> -> vector<82x64xf32>
    %56 = arith.addf %50, %55 : vector<82x64xf32>
    %57 = vector.extract_strided_slice %15 {offsets = [15, 0], sizes = [82, 32], strides = [1, 1]} : vector<98x32xf32> to vector<82x32xf32>
    %58 = arith.truncf %57 : vector<82x32xf32> to vector<82x32xbf16>
    %c7 = arith.constant 7 : index
    %c0_28 = arith.constant 0 : index
    %c0_29 = arith.constant 0 : index
    %59 = vector.load %arg4[%c7, %c0_28, %c0_29] : memref<9x32x64xbf16, #tpu.memory_space<vmem>>, vector<1x32x64xbf16>
    %60 = vector.shape_cast %59 : vector<1x32x64xbf16> to vector<32x64xbf16>
    %cst_30 = arith.constant dense<0.000000e+00> : vector<82x64xf32>
    %61 = tpu.matmul %58, %60, %cst_30 {dimension_numbers = #tpu.dot_dimension_numbers<[1], [0], [0], [1], [0, 0, 1, 1], [], []>} : vector<82x32xbf16>, vector<32x64xbf16>, vector<82x64xf32> -> vector<82x64xf32>
    %62 = arith.addf %56, %61 : vector<82x64xf32>
    %63 = vector.extract_strided_slice %15 {offsets = [16, 0], sizes = [82, 32], strides = [1, 1]} : vector<98x32xf32> to vector<82x32xf32>
    %64 = arith.truncf %63 : vector<82x32xf32> to vector<82x32xbf16>
    %c8 = arith.constant 8 : index
    %c0_31 = arith.constant 0 : index
    %c0_32 = arith.constant 0 : index
    %65 = vector.load %arg4[%c8, %c0_31, %c0_32] : memref<9x32x64xbf16, #tpu.memory_space<vmem>>, vector<1x32x64xbf16>
    %66 = vector.shape_cast %65 : vector<1x32x64xbf16> to vector<32x64xbf16>
    %cst_33 = arith.constant dense<0.000000e+00> : vector<82x64xf32>
    %67 = tpu.matmul %64, %66, %cst_33 {dimension_numbers = #tpu.dot_dimension_numbers<[1], [0], [0], [1], [0, 0, 1, 1], [], []>} : vector<82x32xbf16>, vector<32x64xbf16>, vector<82x64xf32> -> vector<82x64xf32>
    %68 = arith.addf %62, %67 : vector<82x64xf32>
    %69 = vector.extract_strided_slice %68 {offsets = [0, 0], sizes = [1, 64], strides = [1, 1]} : vector<82x64xf32> to vector<1x64xf32>
    %70 = vector.extract_strided_slice %68 {offsets = [1, 0], sizes = [1, 64], strides = [1, 1]} : vector<82x64xf32> to vector<1x64xf32>
    %71 = arith.maximumf %69, %70 : vector<1x64xf32>
    %72 = vector.extract_strided_slice %68 {offsets = [7, 0], sizes = [1, 64], strides = [1, 1]} : vector<82x64xf32> to vector<1x64xf32>
    %73 = vector.extract_strided_slice %68 {offsets = [8, 0], sizes = [1, 64], strides = [1, 1]} : vector<82x64xf32> to vector<1x64xf32>
    %74 = arith.maximumf %72, %73 : vector<1x64xf32>
    %75 = arith.maximumf %71, %74 : vector<1x64xf32>
    %c0_34 = arith.constant 0 : index
    %c0_35 = arith.constant 0 : index
    %76 = vector.load %arg5[%c0_34, %c0_35] : memref<1x64xf32, #tpu.memory_space<vmem>>, vector<1x64xf32>
    %77 = arith.addf %75, %76 : vector<1x64xf32>
    %cst_36 = arith.constant 0.00999999977 : f32
    %78 = vector.broadcast %cst_36 : f32 to vector<1x64xf32>
    %79 = arith.mulf %78, %77 : vector<1x64xf32>
    %80 = arith.maximumf %77, %79 : vector<1x64xf32>
    %81 = arith.truncf %80 : vector<1x64xf32> to vector<1x64xbf16>
    %c0_37 = arith.constant 0 : index
    %c0_38 = arith.constant 0 : index
    %c0_39 = arith.constant 0 : index
    %82 = vector.load %arg6[%c0_37, %c0_38, %c0_39] : memref<4x64x128xbf16, #tpu.memory_space<vmem>>, vector<1x64x128xbf16>
    %83 = vector.shape_cast %82 : vector<1x64x128xbf16> to vector<64x128xbf16>
    %cst_40 = arith.constant dense<0.000000e+00> : vector<1x128xf32>
    %84 = tpu.matmul %81, %83, %cst_40 {dimension_numbers = #tpu.dot_dimension_numbers<[1], [0], [0], [1], [0, 0, 1, 1], [], []>} : vector<1x64xbf16>, vector<64x128xbf16>, vector<1x128xf32> -> vector<1x128xf32>
    %85 = vector.extract_strided_slice %68 {offsets = [2, 0], sizes = [1, 64], strides = [1, 1]} : vector<82x64xf32> to vector<1x64xf32>
    %86 = vector.extract_strided_slice %68 {offsets = [3, 0], sizes = [1, 64], strides = [1, 1]} : vector<82x64xf32> to vector<1x64xf32>
    %87 = arith.maximumf %85, %86 : vector<1x64xf32>
    %88 = vector.extract_strided_slice %68 {offsets = [9, 0], sizes = [1, 64], strides = [1, 1]} : vector<82x64xf32> to vector<1x64xf32>
    %89 = vector.extract_strided_slice %68 {offsets = [10, 0], sizes = [1, 64], strides = [1, 1]} : vector<82x64xf32> to vector<1x64xf32>
    %90 = arith.maximumf %88, %89 : vector<1x64xf32>
    %91 = arith.maximumf %87, %90 : vector<1x64xf32>
    %c0_41 = arith.constant 0 : index
    %c0_42 = arith.constant 0 : index
    %92 = vector.load %arg5[%c0_41, %c0_42] : memref<1x64xf32, #tpu.memory_space<vmem>>, vector<1x64xf32>
    %93 = arith.addf %91, %92 : vector<1x64xf32>
    %cst_43 = arith.constant 0.00999999977 : f32
    %94 = vector.broadcast %cst_43 : f32 to vector<1x64xf32>
    %95 = arith.mulf %94, %93 : vector<1x64xf32>
    %96 = arith.maximumf %93, %95 : vector<1x64xf32>
    %97 = arith.truncf %96 : vector<1x64xf32> to vector<1x64xbf16>
    %c1_44 = arith.constant 1 : index
    %c0_45 = arith.constant 0 : index
    %c0_46 = arith.constant 0 : index
    %98 = vector.load %arg6[%c1_44, %c0_45, %c0_46] : memref<4x64x128xbf16, #tpu.memory_space<vmem>>, vector<1x64x128xbf16>
    %99 = vector.shape_cast %98 : vector<1x64x128xbf16> to vector<64x128xbf16>
    %cst_47 = arith.constant dense<0.000000e+00> : vector<1x128xf32>
    %100 = tpu.matmul %97, %99, %cst_47 {dimension_numbers = #tpu.dot_dimension_numbers<[1], [0], [0], [1], [0, 0, 1, 1], [], []>} : vector<1x64xbf16>, vector<64x128xbf16>, vector<1x128xf32> -> vector<1x128xf32>
    %101 = arith.addf %84, %100 : vector<1x128xf32>
    %102 = vector.extract_strided_slice %68 {offsets = [14, 0], sizes = [1, 64], strides = [1, 1]} : vector<82x64xf32> to vector<1x64xf32>
    %103 = vector.extract_strided_slice %68 {offsets = [15, 0], sizes = [1, 64], strides = [1, 1]} : vector<82x64xf32> to vector<1x64xf32>
    %104 = arith.maximumf %102, %103 : vector<1x64xf32>
    %105 = vector.extract_strided_slice %68 {offsets = [21, 0], sizes = [1, 64], strides = [1, 1]} : vector<82x64xf32> to vector<1x64xf32>
    %106 = vector.extract_strided_slice %68 {offsets = [22, 0], sizes = [1, 64], strides = [1, 1]} : vector<82x64xf32> to vector<1x64xf32>
    %107 = arith.maximumf %105, %106 : vector<1x64xf32>
    %108 = arith.maximumf %104, %107 : vector<1x64xf32>
    %c0_48 = arith.constant 0 : index
    %c0_49 = arith.constant 0 : index
    %109 = vector.load %arg5[%c0_48, %c0_49] : memref<1x64xf32, #tpu.memory_space<vmem>>, vector<1x64xf32>
    %110 = arith.addf %108, %109 : vector<1x64xf32>
    %cst_50 = arith.constant 0.00999999977 : f32
    %111 = vector.broadcast %cst_50 : f32 to vector<1x64xf32>
    %112 = arith.mulf %111, %110 : vector<1x64xf32>
    %113 = arith.maximumf %110, %112 : vector<1x64xf32>
    %114 = arith.truncf %113 : vector<1x64xf32> to vector<1x64xbf16>
    %c2_51 = arith.constant 2 : index
    %c0_52 = arith.constant 0 : index
    %c0_53 = arith.constant 0 : index
    %115 = vector.load %arg6[%c2_51, %c0_52, %c0_53] : memref<4x64x128xbf16, #tpu.memory_space<vmem>>, vector<1x64x128xbf16>
    %116 = vector.shape_cast %115 : vector<1x64x128xbf16> to vector<64x128xbf16>
    %cst_54 = arith.constant dense<0.000000e+00> : vector<1x128xf32>
    %117 = tpu.matmul %114, %116, %cst_54 {dimension_numbers = #tpu.dot_dimension_numbers<[1], [0], [0], [1], [0, 0, 1, 1], [], []>} : vector<1x64xbf16>, vector<64x128xbf16>, vector<1x128xf32> -> vector<1x128xf32>
    %118 = arith.addf %101, %117 : vector<1x128xf32>
    %119 = vector.extract_strided_slice %68 {offsets = [16, 0], sizes = [1, 64], strides = [1, 1]} : vector<82x64xf32> to vector<1x64xf32>
    %120 = vector.extract_strided_slice %68 {offsets = [17, 0], sizes = [1, 64], strides = [1, 1]} : vector<82x64xf32> to vector<1x64xf32>
    %121 = arith.maximumf %119, %120 : vector<1x64xf32>
    %122 = vector.extract_strided_slice %68 {offsets = [23, 0], sizes = [1, 64], strides = [1, 1]} : vector<82x64xf32> to vector<1x64xf32>
    %123 = vector.extract_strided_slice %68 {offsets = [24, 0], sizes = [1, 64], strides = [1, 1]} : vector<82x64xf32> to vector<1x64xf32>
    %124 = arith.maximumf %122, %123 : vector<1x64xf32>
    %125 = arith.maximumf %121, %124 : vector<1x64xf32>
    %c0_55 = arith.constant 0 : index
    %c0_56 = arith.constant 0 : index
    %126 = vector.load %arg5[%c0_55, %c0_56] : memref<1x64xf32, #tpu.memory_space<vmem>>, vector<1x64xf32>
    %127 = arith.addf %125, %126 : vector<1x64xf32>
    %cst_57 = arith.constant 0.00999999977 : f32
    %128 = vector.broadcast %cst_57 : f32 to vector<1x64xf32>
    %129 = arith.mulf %128, %127 : vector<1x64xf32>
    %130 = arith.maximumf %127, %129 : vector<1x64xf32>
    %131 = arith.truncf %130 : vector<1x64xf32> to vector<1x64xbf16>
    %c3_58 = arith.constant 3 : index
    %c0_59 = arith.constant 0 : index
    %c0_60 = arith.constant 0 : index
    %132 = vector.load %arg6[%c3_58, %c0_59, %c0_60] : memref<4x64x128xbf16, #tpu.memory_space<vmem>>, vector<1x64x128xbf16>
    %133 = vector.shape_cast %132 : vector<1x64x128xbf16> to vector<64x128xbf16>
    %cst_61 = arith.constant dense<0.000000e+00> : vector<1x128xf32>
    %134 = tpu.matmul %131, %133, %cst_61 {dimension_numbers = #tpu.dot_dimension_numbers<[1], [0], [0], [1], [0, 0, 1, 1], [], []>} : vector<1x64xbf16>, vector<64x128xbf16>, vector<1x128xf32> -> vector<1x128xf32>
    %135 = arith.addf %118, %134 : vector<1x128xf32>
    %c0_62 = arith.constant 0 : index
    %c0_63 = arith.constant 0 : index
    %136 = vector.load %arg7[%c0_62, %c0_63] : memref<1x128xf32, #tpu.memory_space<vmem>>, vector<1x128xf32>
    %137 = arith.addf %135, %136 : vector<1x128xf32>
    %cst_64 = arith.constant dense<0xFF800000> : vector<1xf32>
    %138 = vector.multi_reduction <maximumf>, %137, %cst_64 [1] : vector<1x128xf32> to vector<1xf32>
    %139 = vector.shape_cast %138 : vector<1xf32> to vector<1x1xf32>
    %140 = vector.broadcast %139 : vector<1x1xf32> to vector<1x128xf32>
    %141 = arith.subf %137, %140 : vector<1x128xf32>
    %142 = math.exp %141 : vector<1x128xf32>
    %cst_65 = arith.constant dense<0.000000e+00> : vector<1xf32>
    %143 = vector.multi_reduction <add>, %142, %cst_65 [1] : vector<1x128xf32> to vector<1xf32>
    %144 = vector.shape_cast %143 : vector<1xf32> to vector<1x1xf32>
    %145 = vector.broadcast %144 : vector<1x1xf32> to vector<1x128xf32>
    %146 = arith.divf %142, %145 : vector<1x128xf32>
    %c0_66 = arith.constant 0 : index
    %c0_67 = arith.constant 0 : index
    %147 = vector.load %arg8[%c0_66, %c0_67] : memref<2x128xf32, #tpu.memory_space<vmem>>, vector<1x128xf32>
    tpu.vector_store %arg8[%c0_66, %c0_67], %146 {strides = array<i32>} : memref<2x128xf32, #tpu.memory_space<vmem>>, vector<1x128xf32>,
    %148 = vector.extract_strided_slice %68 {offsets = [49, 0], sizes = [1, 64], strides = [1, 1]} : vector<82x64xf32> to vector<1x64xf32>
    %149 = vector.extract_strided_slice %68 {offsets = [50, 0], sizes = [1, 64], strides = [1, 1]} : vector<82x64xf32> to vector<1x64xf32>
    %150 = arith.maximumf %148, %149 : vector<1x64xf32>
    %151 = vector.extract_strided_slice %68 {offsets = [56, 0], sizes = [1, 64], strides = [1, 1]} : vector<82x64xf32> to vector<1x64xf32>
    %152 = vector.extract_strided_slice %68 {offsets = [57, 0], sizes = [1, 64], strides = [1, 1]} : vector<82x64xf32> to vector<1x64xf32>
    %153 = arith.maximumf %151, %152 : vector<1x64xf32>
    %154 = arith.maximumf %150, %153 : vector<1x64xf32>
    %c0_68 = arith.constant 0 : index
    %c0_69 = arith.constant 0 : index
    %155 = vector.load %arg5[%c0_68, %c0_69] : memref<1x64xf32, #tpu.memory_space<vmem>>, vector<1x64xf32>
    %156 = arith.addf %154, %155 : vector<1x64xf32>
    %cst_70 = arith.constant 0.00999999977 : f32
    %157 = vector.broadcast %cst_70 : f32 to vector<1x64xf32>
    %158 = arith.mulf %157, %156 : vector<1x64xf32>
    %159 = arith.maximumf %156, %158 : vector<1x64xf32>
    %160 = arith.truncf %159 : vector<1x64xf32> to vector<1x64xbf16>
    %c0_71 = arith.constant 0 : index
    %c0_72 = arith.constant 0 : index
    %c0_73 = arith.constant 0 : index
    %161 = vector.load %arg6[%c0_71, %c0_72, %c0_73] : memref<4x64x128xbf16, #tpu.memory_space<vmem>>, vector<1x64x128xbf16>
    %162 = vector.shape_cast %161 : vector<1x64x128xbf16> to vector<64x128xbf16>
    %cst_74 = arith.constant dense<0.000000e+00> : vector<1x128xf32>
    %163 = tpu.matmul %160, %162, %cst_74 {dimension_numbers = #tpu.dot_dimension_numbers<[1], [0], [0], [1], [0, 0, 1, 1], [], []>} : vector<1x64xbf16>, vector<64x128xbf16>, vector<1x128xf32> -> vector<1x128xf32>
    %164 = vector.extract_strided_slice %68 {offsets = [51, 0], sizes = [1, 64], strides = [1, 1]} : vector<82x64xf32> to vector<1x64xf32>
    %165 = vector.extract_strided_slice %68 {offsets = [52, 0], sizes = [1, 64], strides = [1, 1]} : vector<82x64xf32> to vector<1x64xf32>
    %166 = arith.maximumf %164, %165 : vector<1x64xf32>
    %167 = vector.extract_strided_slice %68 {offsets = [58, 0], sizes = [1, 64], strides = [1, 1]} : vector<82x64xf32> to vector<1x64xf32>
    %168 = vector.extract_strided_slice %68 {offsets = [59, 0], sizes = [1, 64], strides = [1, 1]} : vector<82x64xf32> to vector<1x64xf32>
    %169 = arith.maximumf %167, %168 : vector<1x64xf32>
    %170 = arith.maximumf %166, %169 : vector<1x64xf32>
    %c0_75 = arith.constant 0 : index
    %c0_76 = arith.constant 0 : index
    %171 = vector.load %arg5[%c0_75, %c0_76] : memref<1x64xf32, #tpu.memory_space<vmem>>, vector<1x64xf32>
    %172 = arith.addf %170, %171 : vector<1x64xf32>
    %cst_77 = arith.constant 0.00999999977 : f32
    %173 = vector.broadcast %cst_77 : f32 to vector<1x64xf32>
    %174 = arith.mulf %173, %172 : vector<1x64xf32>
    %175 = arith.maximumf %172, %174 : vector<1x64xf32>
    %176 = arith.truncf %175 : vector<1x64xf32> to vector<1x64xbf16>
    %c1_78 = arith.constant 1 : index
    %c0_79 = arith.constant 0 : index
    %c0_80 = arith.constant 0 : index
    %177 = vector.load %arg6[%c1_78, %c0_79, %c0_80] : memref<4x64x128xbf16, #tpu.memory_space<vmem>>, vector<1x64x128xbf16>
    %178 = vector.shape_cast %177 : vector<1x64x128xbf16> to vector<64x128xbf16>
    %cst_81 = arith.constant dense<0.000000e+00> : vector<1x128xf32>
    %179 = tpu.matmul %176, %178, %cst_81 {dimension_numbers = #tpu.dot_dimension_numbers<[1], [0], [0], [1], [0, 0, 1, 1], [], []>} : vector<1x64xbf16>, vector<64x128xbf16>, vector<1x128xf32> -> vector<1x128xf32>
    %180 = arith.addf %163, %179 : vector<1x128xf32>
    %181 = vector.extract_strided_slice %68 {offsets = [63, 0], sizes = [1, 64], strides = [1, 1]} : vector<82x64xf32> to vector<1x64xf32>
    %182 = vector.extract_strided_slice %68 {offsets = [64, 0], sizes = [1, 64], strides = [1, 1]} : vector<82x64xf32> to vector<1x64xf32>
    %183 = arith.maximumf %181, %182 : vector<1x64xf32>
    %184 = vector.extract_strided_slice %68 {offsets = [70, 0], sizes = [1, 64], strides = [1, 1]} : vector<82x64xf32> to vector<1x64xf32>
    %185 = vector.extract_strided_slice %68 {offsets = [71, 0], sizes = [1, 64], strides = [1, 1]} : vector<82x64xf32> to vector<1x64xf32>
    %186 = arith.maximumf %184, %185 : vector<1x64xf32>
    %187 = arith.maximumf %183, %186 : vector<1x64xf32>
    %c0_82 = arith.constant 0 : index
    %c0_83 = arith.constant 0 : index
    %188 = vector.load %arg5[%c0_82, %c0_83] : memref<1x64xf32, #tpu.memory_space<vmem>>, vector<1x64xf32>
    %189 = arith.addf %187, %188 : vector<1x64xf32>
    %cst_84 = arith.constant 0.00999999977 : f32
    %190 = vector.broadcast %cst_84 : f32 to vector<1x64xf32>
    %191 = arith.mulf %190, %189 : vector<1x64xf32>
    %192 = arith.maximumf %189, %191 : vector<1x64xf32>
    %193 = arith.truncf %192 : vector<1x64xf32> to vector<1x64xbf16>
    %c2_85 = arith.constant 2 : index
    %c0_86 = arith.constant 0 : index
    %c0_87 = arith.constant 0 : index
    %194 = vector.load %arg6[%c2_85, %c0_86, %c0_87] : memref<4x64x128xbf16, #tpu.memory_space<vmem>>, vector<1x64x128xbf16>
    %195 = vector.shape_cast %194 : vector<1x64x128xbf16> to vector<64x128xbf16>
    %cst_88 = arith.constant dense<0.000000e+00> : vector<1x128xf32>
    %196 = tpu.matmul %193, %195, %cst_88 {dimension_numbers = #tpu.dot_dimension_numbers<[1], [0], [0], [1], [0, 0, 1, 1], [], []>} : vector<1x64xbf16>, vector<64x128xbf16>, vector<1x128xf32> -> vector<1x128xf32>
    %197 = arith.addf %180, %196 : vector<1x128xf32>
    %198 = vector.extract_strided_slice %68 {offsets = [65, 0], sizes = [1, 64], strides = [1, 1]} : vector<82x64xf32> to vector<1x64xf32>
    %199 = vector.extract_strided_slice %68 {offsets = [66, 0], sizes = [1, 64], strides = [1, 1]} : vector<82x64xf32> to vector<1x64xf32>
    %200 = arith.maximumf %198, %199 : vector<1x64xf32>
    %201 = vector.extract_strided_slice %68 {offsets = [72, 0], sizes = [1, 64], strides = [1, 1]} : vector<82x64xf32> to vector<1x64xf32>
    %202 = vector.extract_strided_slice %68 {offsets = [73, 0], sizes = [1, 64], strides = [1, 1]} : vector<82x64xf32> to vector<1x64xf32>
    %203 = arith.maximumf %201, %202 : vector<1x64xf32>
    %204 = arith.maximumf %200, %203 : vector<1x64xf32>
    %c0_89 = arith.constant 0 : index
    %c0_90 = arith.constant 0 : index
    %205 = vector.load %arg5[%c0_89, %c0_90] : memref<1x64xf32, #tpu.memory_space<vmem>>, vector<1x64xf32>
    %206 = arith.addf %204, %205 : vector<1x64xf32>
    %cst_91 = arith.constant 0.00999999977 : f32
    %207 = vector.broadcast %cst_91 : f32 to vector<1x64xf32>
    %208 = arith.mulf %207, %206 : vector<1x64xf32>
    %209 = arith.maximumf %206, %208 : vector<1x64xf32>
    %210 = arith.truncf %209 : vector<1x64xf32> to vector<1x64xbf16>
    %c3_92 = arith.constant 3 : index
    %c0_93 = arith.constant 0 : index
    %c0_94 = arith.constant 0 : index
    %211 = vector.load %arg6[%c3_92, %c0_93, %c0_94] : memref<4x64x128xbf16, #tpu.memory_space<vmem>>, vector<1x64x128xbf16>
    %212 = vector.shape_cast %211 : vector<1x64x128xbf16> to vector<64x128xbf16>
    %cst_95 = arith.constant dense<0.000000e+00> : vector<1x128xf32>
    %213 = tpu.matmul %210, %212, %cst_95 {dimension_numbers = #tpu.dot_dimension_numbers<[1], [0], [0], [1], [0, 0, 1, 1], [], []>} : vector<1x64xbf16>, vector<64x128xbf16>, vector<1x128xf32> -> vector<1x128xf32>
    %214 = arith.addf %197, %213 : vector<1x128xf32>
    %c0_96 = arith.constant 0 : index
    %c0_97 = arith.constant 0 : index
    %215 = vector.load %arg7[%c0_96, %c0_97] : memref<1x128xf32, #tpu.memory_space<vmem>>, vector<1x128xf32>
    %216 = arith.addf %214, %215 : vector<1x128xf32>
    %cst_98 = arith.constant dense<0xFF800000> : vector<1xf32>
    %217 = vector.multi_reduction <maximumf>, %216, %cst_98 [1] : vector<1x128xf32> to vector<1xf32>
    %218 = vector.shape_cast %217 : vector<1xf32> to vector<1x1xf32>
    %219 = vector.broadcast %218 : vector<1x1xf32> to vector<1x128xf32>
    %220 = arith.subf %216, %219 : vector<1x128xf32>
    %221 = math.exp %220 : vector<1x128xf32>
    %cst_99 = arith.constant dense<0.000000e+00> : vector<1xf32>
    %222 = vector.multi_reduction <add>, %221, %cst_99 [1] : vector<1x128xf32> to vector<1xf32>
    %223 = vector.shape_cast %222 : vector<1xf32> to vector<1x1xf32>
    %224 = vector.broadcast %223 : vector<1x1xf32> to vector<1x128xf32>
    %225 = arith.divf %221, %224 : vector<1x128xf32>
    %c1_100 = arith.constant 1 : index
    %c0_101 = arith.constant 0 : index
    %226 = vector.load %arg8[%c1_100, %c0_101] : memref<2x128xf32, #tpu.memory_space<vmem>>, vector<1x128xf32>
    tpu.vector_store %arg8[%c1_100, %c0_101], %225 {strides = array<i32>} : memref<2x128xf32, #tpu.memory_space<vmem>>, vector<1x128xf32>,
    return
  }
  func.func @transform_0(%arg0: i32) -> (i32, i32) {
    %c0_i32 = arith.constant 0 : i32
    %c0_i32_0 = arith.constant 0 : i32
    return %arg0, %c0_i32 : i32, i32
  }
  func.func @transform_1(%arg0: i32) -> (i32, i32) {
    %c0_i32 = arith.constant 0 : i32
    %c0_i32_0 = arith.constant 0 : i32
    %c0_i32_1 = arith.constant 0 : i32
    return %c0_i32, %c0_i32_0 : i32, i32
  }
  func.func @transform_2(%arg0: i32) -> (i32, i32) {
    %c0_i32 = arith.constant 0 : i32
    %c0_i32_0 = arith.constant 0 : i32
    %c0_i32_1 = arith.constant 0 : i32
    return %c0_i32, %c0_i32_0 : i32, i32
  }
  func.func @transform_3(%arg0: i32) -> (i32, i32, i32) {
    %c0_i32 = arith.constant 0 : i32
    %c0_i32_0 = arith.constant 0 : i32
    %c0_i32_1 = arith.constant 0 : i32
    %c0_i32_2 = arith.constant 0 : i32
    return %c0_i32, %c0_i32_0, %c0_i32_1 : i32, i32, i32
  }
  func.func @transform_4(%arg0: i32) -> (i32, i32) {
    %c0_i32 = arith.constant 0 : i32
    %c0_i32_0 = arith.constant 0 : i32
    %c0_i32_1 = arith.constant 0 : i32
    return %c0_i32, %c0_i32_0 : i32, i32
  }
  func.func @transform_5(%arg0: i32) -> (i32, i32, i32) {
    %c0_i32 = arith.constant 0 : i32
    %c0_i32_0 = arith.constant 0 : i32
    %c0_i32_1 = arith.constant 0 : i32
    %c0_i32_2 = arith.constant 0 : i32
    return %c0_i32, %c0_i32_0, %c0_i32_1 : i32, i32, i32
  }
  func.func @transform_6(%arg0: i32) -> (i32, i32) {
    %c0_i32 = arith.constant 0 : i32
    %c0_i32_0 = arith.constant 0 : i32
    %c0_i32_1 = arith.constant 0 : i32
    return %c0_i32, %c0_i32_0 : i32, i32
  }
  func.func @transform_7(%arg0: i32) -> (i32, i32) {
    %c0_i32 = arith.constant 0 : i32
    %c0_i32_0 = arith.constant 0 : i32
    return %arg0, %c0_i32 : i32, i32
  }
}

</mosaic_0001>

<bundles_post_ra>
// kernel: mul.4
= control target key start
LH: loop header
LB: loop body
LE: loop exit
PB: predicated region body
PF: predicated region fallthrough
CT: control target
= control target key end

     0   :  { %vm16_vm0 = vcmask 261120   ;;  %s61_s0 = inlined_call_operand.vmem [shape: f32[3,3,32], index: 0, kind: input, shape index: {}]   ;;  %s62_s1 = inlined_call_operand.vmem [shape: f32[9,32], index: 1, kind: output, shape index: {}]  }
   0x1   :  { %v29_v0 = vld [vmem:[%s61_s0 + $0x8] sm:$0xf]  ;;  %v30_v1 = vld [vmem:[%s61_s0 + $0x4] sm:$0xf]  ;;  %v13_v2 = vld [vmem:[%s61_s0] sm:$0xf] }
   0x2   :  { %8 = vst [vmem:[#allocation0 + $0x10] sm:$0xf] %v29_v0  ;;  %12 = vst [vmem:[#allocation0 + $0x8] sm:$0xf] %v30_v1 }
   0x3   :  { %14 = vst [vmem:[#allocation0] sm:$0xf] %v13_v2 }
   0x9   :  { %v19_v4 = vld [vmem:[#allocation0 + $0x8] sm:$0x7]   ;;  %v24_v5 = vld [vmem:[#allocation0 + $0x10] sm:$0x7]  }
   0xa   :  { %v15_v3 = vld [vmem:[#allocation0] sm:$0x7]   ;;  %31 = vst.msk [vmem:[%s62_s1 + $0x3] sm:$0x7] %vm16_vm0, %v19_v4   ;;  %32 = vst.msk [vmem:[%s62_s1 + $0x6] sm:$0x7] %vm16_vm0, %v24_v5  }
   0xb   :  { %17 = vst.msk [vmem:[%s62_s1] sm:$0x7] %vm16_vm0, %v15_v3  }

// kernel: convnet_forward.1
= control target key start
LH: loop header
LB: loop body
LE: loop exit
PB: predicated region body
PF: predicated region fallthrough
CT: control target
= control target key end

     0   :  { %v3238_v1 = vmov 0.0   ;;  %vm3239_vm0 = vmmov 0   ;;  %vm116_vm1 = vcmask 1041408   ;;  %vm94_vm2 = vcmask 293888   ;;  %s4034_s0 = inlined_call_operand.vmem [shape: bf16[98,36], index: 0, kind: input, shape index: {}]   ;;  %s4035_s1 = inlined_call_operand.vmem [shape: bf16[36,128], index: 1, kind: input, shape index: {}]   ;;  %s4036_s2 = inlined_call_operand.vmem [shape: f32[1,32], index: 2, kind: input, shape index: {}]   ;;  %s4037_s3 = inlined_call_operand.vmem [shape: bf16[9,32,64], index: 3, kind: input, shape index: {}]   ;;  %s4038_s4 = inlined_call_operand.vmem [shape: f32[1,64], index: 4, kind: input, shape index: {}]   ;;  %s4039_s5 = inlined_call_operand.vmem [shape: bf16[4,64,128], index: 5, kind: input, shape index: {}]   ;;  %s4040_s6 = inlined_call_operand.vmem [shape: f32[1,128], index: 6, kind: input, shape index: {}]   ;;  %s4041_s7 = inlined_call_operand.hbm [shape: f32[2,128], index: 7, kind: output, shape index: {}]  }
   0x1   :  { %v3146_v0 = vld [vmem:[%s4035_s1] sm:$0xff]   ;;  %2768 = vmatprep.subr.bf16.mxu0 %v3238_v1  ;;  %v3147_v2 = vld [vmem:[%s4035_s1 + $0x8] sm:$0xff]   ;;  %v3148_v3 = vld [vmem:[%s4035_s1 + $0x10] ss:$0 sps:$4 sm:$0x33]   ;;  %2774 = vmatprep.mubr.msk.bf16.mxu0 %vm3239_vm0, %v3238_v1 }
   0x2   :  { %2769 = vmatpush3.bf16.msra.mxu0 %v3146_v0  ;;  %v118_v4 = vsel %vm116_vm1, %v3148_v3, 0  ;;  %v3149_v5 = vld [vmem:[%s4034_s0] sm:$0xff]   ;;  %v3150_v6 = vld [vmem:[%s4034_s0 + $0x8] sm:$0xff]   ;;  %v3151_v7 = vld [vmem:[%s4034_s0 + $0x10] sm:$0xff]  }
   0x3   :  { %2770 = vmatprep.subr.bf16.mxu0 %v3238_v1  ;;  %v3152_v8 = vld [vmem:[%s4034_s0 + $0x18] sm:$0xff]   ;;  %v3153_v9 = vld [vmem:[%s4034_s0 + $0x20] sm:$0xff]  }
   0x6   :  { %2771 = vmatpush3.bf16.msra.mxu0 %v3147_v2 }
   0x7   :  { %2772 = vmatprep.subr.bf16.mxu0 %v3238_v1 }
   0xa   :  { %2773 = vmatpush3.bf16.msra.mxu0 %v118_v4 }
   0xd   :  { %2775 = vmatmul.mubr.msk.bf16.vlgmr.msra.gmra.mrb[0].mxu0 %vm94_vm2, %v3149_v5 }
   0xe   :  { %2778 = vmatprep.mubr.msk.bf16.mxu0 %vm3239_vm0, %v3238_v1 }
  0x15   :  { %2779 = vmatmul.mubr.msk.bf16.gmra.mrb[4].mxu0 %vm94_vm2, %v3150_v6 }
  0x16   :  { %2782 = vmatprep.mubr.msk.bf16.mxu0 %vm3239_vm0, %v3238_v1 }
  0x1d   :  { %2783 = vmatmul.mubr.msk.bf16.gmra.mrb[8].mxu0 %vm94_vm2, %v3151_v7 }
  0x1e   :  { %2786 = vmatprep.mubr.msk.bf16.mxu0 %vm3239_vm0, %v3238_v1 }
  0x25   :  { %2787 = vmatmul.mubr.msk.bf16.gmra.mrb[12].mxu0 %vm94_vm2, %v3152_v8 }
  0x26   :  { %2790 = vmatprep.mubr.msk.bf16.mxu0 %vm3239_vm0, %v3238_v1 }
  0x27   :  { %12 = vsyncpa [#allocation3], 0  ;;  %v3154_v10 = vld [vmem:[%s4034_s0 + $0x28] sm:$0xff]   ;;  %v3155_v11 = vld [vmem:[%s4034_s0 + $0x30] ss:$0 sps:$4 sm:$0x11]  }
  0x28   :  { %s3240_s20 = smov 96   ;;  %s3241_s21 = smov 64   ;;  %v3156_v35 = vld [vmem:[%s4037_s3 + $0x10] sm:$0xff]   ;;  %v3157_v37 = vld [vmem:[%s4037_s3 + $0x18] sm:$0xff]   ;;  %v3417_v41 = vld [vmem:[%s4037_s3] sm:$0xff]   ;;  %vm498_vm4 = vcmask 261120  }
  0x29   :  { %s3242_s0 = smov 32   ;;  %3042 = vmatprep.subr.bf16.mxu1 %v3156_v35  ;;  %2802 = vmatprep.subr.bf16.mxu0 %v3156_v35  ;;  %v3460_v50 = vld [vmem:[%s4036_s2] ss:$0 sm:$0xff]  ;;  %vm438_vm3 = vsmask.f32 7424  ;;  %vm1281_vm6 = vcmask 1044480  }
  0x2a   :  { %3044 = vmatpush3.bf16.msra.mxu1 %v3156_v35  ;;  %2803 = vmatpush3.bf16.msra.mxu0 %v3156_v35  ;;  %vm839_vm5 = vsmask.f32 4352  ;;  %vm706_vm7 = vcmask 1046528   ;;  %vm1740_vm8 = vcmask 523264   ;;  %vm2033_vm9 = vcmask 1040384  }
  0x2b   :  { %3043 = vmatprep.subr.bf16.mxu1 %v3157_v37  ;;  %2804 = vmatprep.subr.bf16.mxu0 %v3157_v37 }
  0x2d   :  { %2791 = vmatmul.mubr.msk.bf16.gmra.mrb[16].mxu0 %vm94_vm2, %v3153_v9 }
  0x2e   :  { %2794 = vmatprep.mubr.msk.bf16.mxu0 %vm3239_vm0, %v3238_v1  ;;  %3045 = vmatpush3.bf16.msra.mxu1 %v3157_v37 }
  0x2f   :  { %2805 = vmatpush3.bf16.msra.mxu0 %v3157_v37  ;;  %2818 = vmatprep.subr.bf16.mxu1 %v3417_v41 }
  0x30   :  { %2946 = vmatprep.subr.bf16.mxu0 %v3238_v1 }
  0x35   :  { %2795 = vmatmul.mubr.msk.bf16.gmra.mrb[20].mxu0 %vm94_vm2, %v3154_v10 }
  0x36   :  { %2798 = vmatprep.mubr.msk.bf16.mxu0 %vm3239_vm0, %v3238_v1 }
  0x3d   :  { %2799 = vmatmul.mubr.msk.bf16.gmra.mrb[24].mxu0 %vm94_vm2, %v3155_v11 }
  0xe0   :  { %v3338_v12 = vpop.f32.mrb[0].mxu0 }
  0xe1   :  { %221 = vrot.lane.b32.xlu1 %v3338_v12, %s3240_s20  ;;  %v2776_v13 = vpop.f32.mrb[1].mxu0 }
  0xe2   :  { %v3342_v14 = vpop.f32.mrb[2].mxu0 }
  0xe3   :  { %223 = vrot.lane.b32.xlu0 %v3342_v14, %s3240_s20  ;;  %v2777_v15 = vpop.f32.mrb[3].mxu0 }
  0xe5   :  { %273 = vrot.lane.b32.xlu1 %v3338_v12, %s3241_s21 }
  0xe7   :  { %275 = vrot.lane.b32.xlu0 %v3342_v14, %s3241_s21 }
  0xe8   :  { %v3350_v16 = vpop.f32.mrb[4].mxu0 }
  0xe9   :  { %325 = vrot.lane.b32.xlu1 %v3338_v12, %s3242_s0  ;;  %v2780_v17 = vpop.f32.mrb[5].mxu0 }
  0xea   :  { %v3354_v18 = vpop.f32.mrb[6].mxu0 }
  0xeb   :  { %327 = vrot.lane.b32.xlu0 %v3342_v14, %s3242_s0  ;;  %v2781_v19 = vpop.f32.mrb[7].mxu0 }
  0xed   :  { %225 = vrot.lane.b32.xlu1 %v3350_v16, %s3240_s20 }
  0xef   :  { %227 = vrot.lane.b32.xlu0 %v3354_v18, %s3240_s20 }
  0xf0   :  { %v3362_v20 = vpop.f32.mrb[8].mxu0 }
  0xf1   :  { %277 = vrot.lane.b32.xlu1 %v3350_v16, %s3241_s21  ;;  %v2784_v21 = vpop.f32.mrb[9].mxu0 }
  0xf2   :  { %v3366_v22 = vpop.f32.mrb[10].mxu0 }
  0xf3   :  { %279 = vrot.lane.b32.xlu0 %v3354_v18, %s3241_s21  ;;  %v2785_v23 = vpop.f32.mrb[11].mxu0 }
  0xf5   :  { %329 = vrot.lane.b32.xlu1 %v3350_v16, %s3242_s0 }
  0xf7   :  { %331 = vrot.lane.b32.xlu0 %v3354_v18, %s3242_s0 }
  0xf8   :  { %v3374_v24 = vpop.f32.mrb[12].mxu0 }
  0xf9   :  { %v2788_v25 = vpop.f32.mrb[13].mxu0 }
  0xfa   :  { %v3376_v26 = vpop.f32.mrb[14].mxu0 }
  0xfb   :  { %v2789_v27 = vpop.f32.mrb[15].mxu0 }
 0x100   :  { %v3378_v28 = vpop.f32.mrb[16].mxu0 }
 0x101   :  { %289 = vrot.lane.b32.xlu1 %v3378_v28, %s3241_s21  ;;  %237 = vrot.lane.b32.xlu0 %v3378_v28, %s3240_s20  ;;  %v2792_v29 = vpop.f32.mrb[17].mxu0 }
 0x102   :  { %v3384_v30 = vpop.f32.mrb[18].mxu0 }
 0x103   :  { %v2793_v31 = vpop.f32.mrb[19].mxu0 }
 0x105   :  { %341 = vrot.lane.b32.xlu0 %v3378_v28, %s3242_s0  ;;  %343 = vrot.lane.b32.xlu1 %v3384_v30, %s3242_s0 }
 0x108   :  { %v3390_v32 = vpop.f32.mrb[20].mxu0 }
 0x109   :  { %239 = vrot.lane.b32.xlu0 %v3384_v30, %s3240_s20  ;;  %241 = vrot.lane.b32.xlu1 %v3390_v32, %s3240_s20  ;;  %v2796_v33 = vpop.f32.mrb[21].mxu0 }
 0x10a   :  { %v3396_v34 = vpop.f32.mrb[22].mxu0 }
 0x10b   :  { %v2797_v36 = vpop.f32.mrb[23].mxu0 }
 0x10d   :  { %291 = vrot.lane.b32.xlu0 %v3384_v30, %s3241_s21  ;;  %293 = vrot.lane.b32.xlu1 %v3390_v32, %s3241_s21 }
 0x110   :  { %v3408_v38 = vpop.f32.mrb[24].mxu0 }
 0x111   :  { %345 = vrot.lane.b32.xlu0 %v3390_v32, %s3242_s0  ;;  %229 = vrot.lane.b32.xlu1 %v3362_v20, %s3240_s20  ;;  %v2800_v39 = vpop.f32.mrb[25].mxu0 }
 0x112   :  { %v205_v40 = vpop.f32.mrb[26].mxu0 }
 0x113   :  { %v2801_v42 = vpop.f32.mrb[27].mxu0 }
 0x115   :  { %231 = vrot.lane.b32.xlu0 %v3366_v22, %s3240_s20  ;;  %233 = vrot.lane.b32.xlu1 %v3374_v24, %s3240_s20 }
 0x119   :  { %235 = vrot.lane.b32.xlu0 %v3376_v26, %s3240_s20  ;;  %281 = vrot.lane.b32.xlu1 %v3362_v20, %s3241_s21 }
 0x11d   :  { %283 = vrot.lane.b32.xlu0 %v3366_v22, %s3241_s21  ;;  %285 = vrot.lane.b32.xlu1 %v3374_v24, %s3241_s21 }
 0x121   :  { %287 = vrot.lane.b32.xlu0 %v3376_v26, %s3241_s21  ;;  %333 = vrot.lane.b32.xlu1 %v3362_v20, %s3242_s0 }
 0x125   :  { %335 = vrot.lane.b32.xlu0 %v3366_v22, %s3242_s0  ;;  %337 = vrot.lane.b32.xlu1 %v3374_v24, %s3242_s0 }
 0x129   :  { %339 = vrot.lane.b32.xlu0 %v3376_v26, %s3242_s0  ;;  %243 = vrot.lane.b32.xlu1 %v3396_v34, %s3240_s20 }
 0x12d   :  { %295 = vrot.lane.b32.xlu0 %v3396_v34, %s3241_s21  ;;  %347 = vrot.lane.b32.xlu1 %v3396_v34, %s3242_s0 }
 0x131   :  { %245 = vrot.lane.b32.xlu0 %v3408_v38, %s3240_s20  ;;  %297 = vrot.lane.b32.xlu1 %v3408_v38, %s3241_s21 }
 0x135   :  { %349 = vrot.lane.b32.xlu0 %v3408_v38, %s3242_s0 }
 0x153   :  { %v222_v43 = vpop.permute.xlu1 %221 }
 0x154   :  { %v260_v46 = vmax.f32 %v3338_v12, %v222_v43 }
 0x155   :  { %v224_v44 = vpop.permute.xlu0 %223 }
 0x156   :  { %v261_v48 = vmax.f32 %v3342_v14, %v224_v44 }
 0x157   :  { %v274_v45 = vpop.permute.xlu1 %273 }
 0x158   :  { %v312_v49 = vmax.f32 %v260_v46, %v274_v45 }
 0x159   :  { %v276_v47 = vpop.permute.xlu0 %275 }
 0x15a   :  { %v313_v52 = vmax.f32 %v261_v48, %v276_v47 }
 0x15b   :  { %v326_v51 = vpop.permute.xlu1 %325 }
 0x15c   :  { %v364_v53 = vmax.f32 %v312_v49, %v326_v51 }
 0x15d   :  { %v328_v54 = vpop.permute.xlu0 %327 }
 0x15e   :  { %v384_v55 = vadd.f32 %v3460_v50, %v364_v53  ;;  %v365_v56 = vmax.f32 %v313_v52, %v328_v54 }
 0x15f   :  { %v226_v57 = vpop.permute.xlu1 %225 }
 0x160   :  { %v397_v58 = vmul.f32 0.01, %v384_v55  ;;  %v385_v59 = vadd.f32 %v3460_v50, %v365_v56  ;;  %v262_v2 = vmax.f32 %v3350_v16, %v226_v57 }
 0x161   :  { %v228_v60 = vpop.permute.xlu0 %227 }
 0x162   :  { %v398_v61 = vmul.f32 0.01, %v385_v59  ;;  %v410_v63 = vmax.f32 %v384_v55, %v397_v58  ;;  %v263_v5 = vmax.f32 %v3354_v18, %v228_v60 }
 0x163   :  { %v278_v62 = vpop.permute.xlu1 %277 }
 0x164   :  { %v411_v0 = vmax.f32 %v385_v59, %v398_v61  ;;  %v314_v6 = vmax.f32 %v262_v2, %v278_v62 }
 0x165   :  { %v280_v3 = vpop.permute.xlu0 %279 }
 0x166   :  { %v3465_v4 = vpack.c.bf16 %v411_v0, %v410_v63  ;;  %v315_v8 = vmax.f32 %v263_v5, %v280_v3 }
 0x167   :  { %v330_v7 = vpop.permute.xlu1 %329 }
 0x168   :  { %v366_v9 = vmax.f32 %v314_v6, %v330_v7  ;;  %v440_v10 = vshrl.u32 %v3465_v4, 16  ;;  %v442_v11 = vshll.u32 %v3465_v4, 16 }
 0x169   :  { %v332_v12 = vpop.permute.xlu0 %331 }
 0x16a   :  { %v386_v13 = vadd.f32 %v3460_v50, %v366_v9  ;;  %v367_v14 = vmax.f32 %v315_v8, %v332_v12  ;;  %v840_v15 = vrot.slane %v440_v10, 3  ;;  %v841_v17 = vrot.slane %v442_v11, 4 }
 0x16b   :  { %v444_v31 = vrot.slane %v442_v11, 1 }
 0x16c   :  { %v399_v16 = vmul.f32 0.01, %v386_v13  ;;  %v387_v19 = vadd.f32 %v3460_v50, %v367_v14  ;;  %v842_v21 = vor.u32 %v841_v17, %v840_v15 }
 0x16d   :  { %v445_v40 = vor.u32 %v444_v31, %v440_v10 }
 0x16e   :  { %v412_v23 = vmax.f32 %v386_v13, %v399_v16  ;;  %v400_v18 = vmul.f32 0.01, %v387_v19 }
 0x170   :  { %v3472_v25 = vpack.c.bf16 %v412_v23, %v411_v0  ;;  %v3474_v27 = vmax.f32 %v387_v19, %v400_v18 }
 0x172   :  { %v3477_v29 = vpack.c.bf16 %v3474_v27, %v412_v23 }
 0x173   :  { %v290_v33 = vpop.permute.xlu1 %289  ;;  %v238_v35 = vpop.permute.xlu0 %237 }
 0x174   :  { %v268_v36 = vmax.f32 %v3378_v28, %v238_v35  ;;  %v447_v37 = vshll.u32 %v3477_v29, 16  ;;  %v451_v39 = vshrl.u32 %v3477_v29, 16 }
 0x176   :  { %v3482_v42 = vrot.slane %v447_v37, 1  ;;  %v843_v43 = vrot.slane %v451_v39, 3  ;;  %v844_v46 = vrot.slane %v447_v37, 4  ;;  %v320_v47 = vmax.f32 %v268_v36, %v290_v33 }
 0x177   :  { %v342_v44 = vpop.permute.xlu0 %341  ;;  %v344_v45 = vpop.permute.xlu1 %343 }
 0x178   :  { %v450_v48 = vsel %vm438_vm3, %v445_v40, %v3482_v42  ;;  %v3489_v28 = vor.u32 %v844_v46, %v843_v43  ;;  %v372_v53 = vmax.f32 %v320_v47, %v342_v44  ;;  %v3159_v47 = vld [vmem:[%s4037_s3 + $0x8] sm:$0xff]  }
 0x179   :  { %2806 = vmatprep.mubr.msk.bf16.mxu0 %vm498_vm4, %v450_v48 }
 0x17a   :  { %v3493_v52 = vsel %vm839_vm5, %v842_v21, %v3489_v28  ;;  %v392_v57 = vadd.f32 %v3460_v50, %v372_v53 }
 0x17b   :  { %v240_v49 = vpop.permute.xlu0 %239  ;;  %v242_v51 = vpop.permute.xlu1 %241 }
 0x17c   :  { %v269_v54 = vmax.f32 %v3384_v30, %v240_v49  ;;  %v270_v58 = vmax.f32 %v3390_v32, %v242_v51  ;;  %v405_v0 = vmul.f32 0.01, %v392_v57 }
 0x17e   :  { %v3500_v8 = vmax.f32 %v392_v57, %v405_v0  ;;  %v3160_v57 = vld [vmem:[%s4037_s3 + $0x20] sm:$0xff]  }
 0x17f   :  { %v292_v55 = vpop.permute.xlu0 %291  ;;  %v294_v56 = vpop.permute.xlu1 %293 }
 0x180   :  { %v321_v59 = vmax.f32 %v269_v54, %v292_v55  ;;  %v322_v61 = vmax.f32 %v270_v58, %v294_v56 }
 0x182   :  { %v373_v60 = vmax.f32 %v321_v59, %v344_v45 }
 0x183   :  { %v346_v62 = vpop.permute.xlu0 %345  ;;  %v230_v63 = vpop.permute.xlu1 %229 }
 0x184   :  { %v393_v2 = vadd.f32 %v3460_v50, %v373_v60  ;;  %v374_v3 = vmax.f32 %v322_v61, %v346_v62  ;;  %v264_v35 = vmax.f32 %v3362_v20, %v230_v63 }
 0x186   :  { %v406_v5 = vmul.f32 0.01, %v393_v2  ;;  %v394_v6 = vadd.f32 %v3460_v50, %v374_v3  ;;  %v3161_v3 = vld [vmem:[%s4037_s3 + $0x28] sm:$0xff]  }
 0x187   :  { %v232_v7 = vpop.permute.xlu0 %231  ;;  %v234_v30 = vpop.permute.xlu1 %233 }
 0x188   :  { %v419_v9 = vmax.f32 %v393_v2, %v406_v5  ;;  %v407_v10 = vmul.f32 0.01, %v394_v6  ;;  %v265_v20 = vmax.f32 %v3366_v22, %v232_v7  ;;  %v266_v51 = vmax.f32 %v3374_v24, %v234_v30 }
 0x18a   :  { %v3503_v32 = vpack.c.bf16 %v419_v9, %v3500_v8  ;;  %v3505_v11 = vmax.f32 %v394_v6, %v407_v10 }
 0x18b   :  { %v236_v12 = vpop.permute.xlu0 %235  ;;  %v282_v13 = vpop.permute.xlu1 %281 }
 0x18c   :  { %v3509_v14 = vpack.c.bf16 %v3505_v11, %v3505_v11  ;;  %v471_v15 = vshll.u32 %v3503_v32, 16  ;;  %v475_v17 = vshrl.u32 %v3503_v32, 16  ;;  %v3514_v16 = vpack.c.bf16 %v3505_v11, %v419_v9 }
 0x18d   :  { %v316_v44 = vmax.f32 %v264_v35, %v282_v13  ;;  %v267_v24 = vmax.f32 %v3376_v26, %v236_v12 }
 0x18e   :  { %v3516_v19 = vrot.slane %v471_v15, 1  ;;  %v479_v21 = vshll.u32 %v3509_v14, 16  ;;  %v855_v31 = vrot.slane %v475_v17, 3  ;;  %v856_v33 = vrot.slane %v471_v15, 4 }
 0x18f   :  { %v284_v23 = vpop.permute.xlu0 %283  ;;  %v286_v18 = vpop.permute.xlu1 %285  ;;  %v483_v40 = vshrl.u32 %v3509_v14, 16 }
 0x190   :  { %v477_v36 = vor.u32 %v475_v17, %v3516_v19  ;;  %v481_v37 = vrot.slane %v479_v21, 1  ;;  %v3522_v43 = vor.u32 %v856_v33, %v855_v31  ;;  %v317_v54 = vmax.f32 %v265_v20, %v284_v23 }
 0x191   :  { %v318_v55 = vmax.f32 %v266_v51, %v286_v18  ;;  %v1282_v31 = vrot.slane %v3472_v25, 3 }
 0x192   :  { %v482_v45 = vsel %vm438_vm3, %v477_v36, %v481_v37  ;;  %v485_v46 = vor.u32 %v483_v40, %v481_v37 }
 0x193   :  { %v288_v48 = vpop.permute.xlu0 %287  ;;  %2814 = vmatprep.mubr.msk.bf16.mxu1 %vm498_vm4, %v482_v45  ;;  %v334_v49 = vpop.permute.xlu1 %333 }
 0x194   :  { %v368_v53 = vmax.f32 %v316_v44, %v334_v49  ;;  %2815 = vmatmul.mubr.msk.bf16.vlgmr.msra.gmra.mrb[0].mxu1 %vm498_vm4, %v485_v46  ;;  %v319_v62 = vmax.f32 %v267_v24, %v288_v48 }
 0x195   :  { %2819 = vmatpush3.bf16.msra.mxu1 %v3417_v41  ;;  %2822 = vmatprep.mubr.msk.bf16.mxu1 %vm498_vm4, %v3465_v4  ;;  %v1116_v41 = vshll.u32 %v3472_v25, 16 }
 0x196   :  { %v388_v56 = vadd.f32 %v3460_v50, %v368_v53  ;;  %2820 = vmatprep.subr.bf16.mxu1 %v3159_v47  ;;  %v707_v53 = vrot.slane %v3465_v4, 1  ;;  %v453_v4 = vor.u32 %v451_v39, %v3482_v42 }
 0x197   :  { %v336_v22 = vpop.permute.xlu0 %335  ;;  %v338_v58 = vpop.permute.xlu1 %337  ;;  %v1118_v12 = vrot.slane %v1116_v41, 1 }
 0x198   :  { %v401_v59 = vmul.f32 0.01, %v388_v56  ;;  %v369_v60 = vmax.f32 %v317_v54, %v336_v22  ;;  %v370_v61 = vmax.f32 %v318_v55, %v338_v58  ;;  %v708_v54 = vrot.slane %v3477_v29, 1 }
 0x199   :  { %2821 = vmatpush3.bf16.msra.mxu1 %v3159_v47 }
 0x19a   :  { %v414_v63 = vmax.f32 %v388_v56, %v401_v59  ;;  %v389_v0 = vadd.f32 %v3460_v50, %v369_v60  ;;  %v390_v2 = vadd.f32 %v3460_v50, %v370_v61  ;;  %2834 = vmatprep.subr.bf16.mxu1 %v3160_v57  ;;  %v1141_v56 = vshll.u32 %v3514_v16, 16 }
 0x19b   :  { %v340_v5 = vpop.permute.xlu0 %339  ;;  %v244_v6 = vpop.permute.xlu1 %243  ;;  %v1145_v60 = vshrl.u32 %v3514_v16, 16 }
 0x19c   :  { %v3547_v26 = vpack.c.bf16 %v414_v63, %v3474_v27  ;;  %v402_v7 = vmul.f32 0.01, %v389_v0  ;;  %v403_v30 = vmul.f32 0.01, %v390_v2  ;;  %v371_v9 = vmax.f32 %v319_v62, %v340_v5  ;;  %2823 = vmatmul.mubr.msk.bf16.vlgmr.msra.gmra.mrb[4].mxu1 %vm498_vm4, %v3477_v29  ;;  %v3558_v27 = vld [vmem:[%s4037_s3 + $0x30] sm:$0xff]  }
 0x19d   :  { %v271_v10 = vmax.f32 %v3396_v34, %v244_v6  ;;  %2835 = vmatpush3.bf16.msra.mxu1 %v3160_v57  ;;  %v1114_v34 = vshrl.u32 %v3472_v25, 16 }
 0x19e   :  { %v415_v13 = vmax.f32 %v389_v0, %v402_v7  ;;  %v416_v15 = vmax.f32 %v390_v2, %v403_v30  ;;  %v391_v17 = vadd.f32 %v3460_v50, %v371_v9  ;;  %2836 = vmatprep.subr.bf16.mxu1 %v3161_v3  ;;  %v1120_v21 = vshll.u32 %v3547_v26, 16 }
 0x19f   :  { %v296_v23 = vpop.permute.xlu0 %295  ;;  %v348_v18 = vpop.permute.xlu1 %347  ;;  %v1283_v33 = vrot.slane %v3547_v26, 3  ;;  %v1119_v44 = vor.u32 %v1118_v12, %v1114_v34  ;;  %v3598_v61 = vrot.slane %v1114_v34, 3  ;;  %v1143_v2 = vrot.slane %v1141_v56, 1 }
 0x1a0   :  { %v3564_v35 = vpack.c.bf16 %v415_v13, %v414_v63  ;;  %v3566_v36 = vpack.c.bf16 %v416_v15, %v415_v13  ;;  %v404_v37 = vmul.f32 0.01, %v391_v17  ;;  %v323_v40 = vmax.f32 %v271_v10, %v296_v23 }
 0x1a1   :  { %2837 = vmatpush3.bf16.msra.mxu1 %v3161_v3  ;;  %v1122_v45 = vrot.slane %v1120_v21, 1  ;;  %v3573_v46 = vsel %vm1281_vm6, %v1282_v31, %v1283_v33  ;;  %v3610_v3 = vrot.slane %v1116_v41, 4  ;;  %v1124_v10 = vshrl.u32 %v3547_v26, 16 }
 0x1a2   :  { %v417_v47 = vmax.f32 %v391_v17, %v404_v37  ;;  %v375_v48 = vmax.f32 %v323_v40, %v348_v18  ;;  %2826 = vmatprep.mubr.msk.bf16.mxu1 %vm498_vm4, %v3564_v35  ;;  %v455_v49 = vshll.u32 %v3564_v35, 16  ;;  %2850 = vmatprep.subr.bf16.mxu1 %v3558_v27  ;;  %v1127_v0 = vshll.u32 %v3566_v36, 16 }
 0x1a3   :  { %v246_v20 = vpop.permute.xlu0 %245  ;;  %v298_v51 = vpop.permute.xlu1 %297  ;;  %v3582_v55 = vsel %vm438_vm3, %v1119_v44, %v1122_v45  ;;  %v1429_v12 = vrot.slane %v1145_v60, 3  ;;  %v1430_v13 = vrot.slane %v1141_v56, 4  ;;  %v710_v23 = vrot.slane %v3564_v35, 1 }
 0x1a4   :  { %v3585_v57 = vpack.c.bf16 %v417_v47, %v416_v15  ;;  %v3588_v22 = vpack.c.bf16 %v3500_v8, %v417_v47  ;;  %v395_v58 = vadd.f32 %v3460_v50, %v375_v48  ;;  %v272_v24 = vmax.f32 %v3408_v38, %v246_v20 }
 0x1a5   :  { %v457_v59 = vrot.slane %v455_v49, 1  ;;  %v459_v8 = vshrl.u32 %v3564_v35, 16  ;;  %v1126_v31 = vor.u32 %v1124_v10, %v1122_v45  ;;  %v1129_v37 = vrot.slane %v1127_v0, 1 }
 0x1a6   :  { %v408_v62 = vmul.f32 0.01, %v395_v58  ;;  %v324_v63 = vmax.f32 %v272_v24, %v298_v51  ;;  %2827 = vmatmul.mubr.msk.bf16.gmra.mrb[8].mxu1 %vm498_vm4, %v3585_v57  ;;  %v463_v38 = vshll.u32 %v3585_v57, 16  ;;  %v467_v9 = vshrl.u32 %v3585_v57, 16 }
 0x1a7   :  { %v458_v39 = vsel %vm438_vm3, %v453_v4, %v457_v59  ;;  %2830 = vmatprep.mubr.msk.bf16.mxu1 %vm498_vm4, %v3503_v32  ;;  %v350_v42 = vpop.permute.xlu0 %349  ;;  %v461_v7 = vor.u32 %v459_v8, %v457_v59  ;;  %v3636_v44 = vsel %vm438_vm3, %v1126_v31, %v1129_v37  ;;  %v1147_v47 = vor.u32 %v1145_v60, %v1143_v2 }
 0x1a8   :  { %v421_v5 = vmax.f32 %v395_v58, %v408_v62  ;;  %2807 = vmatmul.mubr.msk.bf16.vlgmr.msra.gmra.mrb[28].mxu0 %vm498_vm4, %v458_v39  ;;  %v376_v6 = vmax.f32 %v324_v63, %v350_v42  ;;  %v465_v30 = vrot.slane %v463_v38, 1  ;;  %v1289_v48 = vrot.slane %v3514_v16, 3 }
 0x1a9   :  { %v1431_v20 = vor.u32 %v1430_v13, %v1429_v12  ;;  %v1131_v45 = vshrl.u32 %v3566_v36, 16  ;;  %v1134_v56 = vshll.u32 %v3588_v22, 16  ;;  %v711_v24 = vsel %vm706_vm7, %v708_v54, %v710_v23 }
 0x1aa   :  { %v3620_v15 = vpack.c.bf16 %v421_v5, %v3505_v11  ;;  %v396_v41 = vadd.f32 %v3460_v50, %v376_v6  ;;  %v466_v17 = vsel %vm438_vm3, %v461_v7, %v465_v30  ;;  %v469_v18 = vor.u32 %v467_v9, %v465_v30 }
 0x1ab   :  { %2810 = vmatprep.mubr.msk.bf16.mxu0 %vm498_vm4, %v466_v17  ;;  %v3628_v34 = vpack.c.bf16 %v421_v5, %v421_v5  ;;  %v709_v11 = vsel %vm706_vm7, %v707_v53, %v708_v54  ;;  %v1416_v50 = vor.u32 %v3610_v3, %v3598_v61  ;;  %v1417_v53 = vrot.slane %v1124_v10, 3  ;;  %v3163_v17 = vld [vmem:[%s4037_s3 + $0x38] sm:$0xff]  }
 0x1ac   :  { %v409_v40 = vmul.f32 0.01, %v396_v41  ;;  %v474_v58 = vsel %vm438_vm3, %v469_v18, %v3516_v19  ;;  %v1418_v59 = vrot.slane %v1120_v21, 4  ;;  %v1133_v61 = vor.u32 %v1131_v45, %v1129_v37 }
 0x1ad   :  { %v1148_v4 = vshll.u32 %v3628_v34, 16  ;;  %v1136_v62 = vrot.slane %v1134_v56, 1  ;;  %v1138_v63 = vshrl.u32 %v3588_v22, 16  ;;  %v1285_v19 = vrot.slane %v3566_v36, 3 }
 0x1ae   :  { %v3639_v51 = vmax.f32 %v396_v41, %v409_v40  ;;  %2831 = vmatmul.mubr.msk.bf16.gmra.mrb[0].mxu1 %vm498_vm4, %v3509_v14  ;;  %v1287_v42 = vrot.slane %v3588_v22, 3  ;;  %v1291_v54 = vrot.slane %v3628_v34, 3  ;;  %v1421_v7 = vrot.slane %v1131_v45, 3 }
 0x1af   :  { %2838 = vmatprep.mubr.msk.bf16.mxu1 %vm498_vm4, %v709_v11  ;;  %v3655_v39 = vrot.slane %v1148_v4, 1  ;;  %v3664_v6 = vsel %vm438_vm3, %v1133_v61, %v1136_v62  ;;  %v1140_v30 = vor.u32 %v1138_v63, %v1136_v62  ;;  %v3673_v12 = vsel %vm1281_vm6, %v1283_v33, %v1285_v19 }
 0x1b0   :  { %v1408_v60 = vpack.c.bf16 %v3639_v51, %v421_v5  ;;  %2811 = vmatmul.mubr.msk.bf16.gmra.mrb[32].mxu0 %vm498_vm4, %v474_v58  ;;  %v712_v5 = vrot.slane %v3585_v57, 1  ;;  %v3679_v18 = vsel %vm1281_vm6, %v1285_v19, %v1287_v42  ;;  %v3682_v31 = vsel %vm1281_vm6, %v1287_v42, %v1289_v48 }
 0x1b1   :  { %2954 = vmatprep.mubr.msk.bf16.mxu0 %vm3239_vm0, %v3238_v1  ;;  %v3668_v10 = vsel %vm438_vm3, %v1147_v47, %v3655_v39  ;;  %v3685_v37 = vsel %vm438_vm3, %v1140_v30, %v1143_v2  ;;  %v3690_v33 = vsel %vm1281_vm6, %v1289_v48, %v1291_v54  ;;  %v1419_v40 = vor.u32 %v1418_v59, %v1417_v53 }
 0x1b2   :  { %v1434_v21 = vshrl.u32 %v1408_v60, 16  ;;  %v1437_v3 = vshll.u32 %v1408_v60, 16  ;;  %v1422_v11 = vrot.slane %v1127_v0, 4  ;;  %v713_v47 = vsel %vm706_vm7, %v710_v23, %v712_v5  ;;  %v3164_v0 = vld [vmem:[%s4037_s3 + $0x40] sm:$0xff]  }
 0x1b3   :  { %v1425_v45 = vrot.slane %v1138_v63, 3  ;;  %v1426_v58 = vrot.slane %v1134_v56, 4  ;;  %v3701_v2 = vsel %vm839_vm5, %v1416_v50, %v1419_v40  ;;  %v714_v59 = vrot.slane %v3503_v32, 1 }
 0x1b4   :  { %v1436_v13 = vrot.slane %v1434_v21, 3  ;;  %v1439_v41 = vrot.slane %v1437_v3, 4  ;;  %v1423_v48 = vor.u32 %v1422_v11, %v1421_v7  ;;  %v848_v62 = vrot.slane %v455_v49, 4  ;;  %v3165_v49 = vld [vmem:[%s4037_s3 + $0x48] sm:$0xff]  }
 0x1b5   :  { %v1427_v53 = vor.u32 %v1426_v58, %v1425_v45  ;;  %v715_v60 = vsel %vm706_vm7, %v712_v5, %v714_v59  ;;  %v852_v63 = vrot.slane %v463_v38, 4  ;;  %v860_v21 = vshrl.u32 %v3620_v15, 16 }
 0x1b6   :  { %2839 = vmatmul.mubr.msk.bf16.vlgmr.msra.gmra.mrb[4].mxu1 %vm498_vm4, %v711_v24  ;;  %v3696_v4 = vor.u32 %v1439_v41, %v1436_v13  ;;  %v3711_v56 = vsel %vm839_vm5, %v1419_v40, %v1423_v48  ;;  %v3167_v13 = vld [vmem:[%s4037_s3 + $0x58] sm:$0xff]  }
 0x1b7   :  { %2851 = vmatpush3.bf16.msra.mxu1 %v3558_v27  ;;  %2842 = vmatprep.mubr.msk.bf16.mxu1 %vm498_vm4, %v713_v47  ;;  %v716_v27 = vrot.slane %v3509_v14, 1  ;;  %v3715_v24 = vsel %vm839_vm5, %v1423_v48, %v1427_v53  ;;  %v3718_v50 = vsel %vm839_vm5, %v1427_v53, %v1431_v20  ;;  %v847_v14 = vrot.slane %v459_v8, 3 }
 0x1b8   :  { %2852 = vmatprep.subr.bf16.mxu1 %v3163_v17  ;;  %v3708_v23 = vsel %vm839_vm5, %v1431_v20, %v3696_v4  ;;  %v851_v20 = vrot.slane %v467_v9, 3  ;;  %v863_v8 = vshll.u32 %v3620_v15, 16  ;;  %v862_v9 = vrot.slane %v860_v21, 3 }
 0x1b9   :  { %v717_v61 = vsel %vm706_vm7, %v714_v59, %v716_v27  ;;  %v849_v19 = vor.u32 %v848_v62, %v847_v14  ;;  %v3859_v59 = vld [vmem:[%s4038_s4] sm:$0x1] }
 0x1ba   :  { %v853_v42 = vor.u32 %v852_v63, %v851_v20  ;;  %v865_v5 = vrot.slane %v863_v8, 4 }
 0x1bb   :  { %2853 = vmatpush3.bf16.msra.mxu1 %v3163_v17  ;;  %v850_v3 = vsel %vm839_vm5, %v3489_v28, %v849_v19  ;;  %v1696_v17 = vlaneseq }
 0x1bc   :  { %2866 = vmatprep.subr.bf16.mxu1 %v3164_v0  ;;  %v854_v38 = vsel %vm839_vm5, %v849_v19, %v853_v42  ;;  %v866_v7 = vor.u32 %v865_v5, %v862_v9  ;;  %v858_v28 = vsel %vm839_vm5, %v853_v42, %v3522_v43 }
 0x1bd   :  { %v1697_v58 = vshrl.u32 %v1696_v17, 7 }
 0x1be   :  { %2843 = vmatmul.mubr.msk.bf16.gmra.mrb[8].mxu1 %vm498_vm4, %v715_v60  ;;  %v867_v30 = vsel %vm839_vm5, %v3522_v43, %v866_v7  ;;  %v3168_v43 = vld [vmem:[%s4037_s3 + $0x60] sm:$0xff]  }
 0x1bf   :  { %2846 = vmatprep.mubr.msk.bf16.mxu1 %vm498_vm4, %v717_v61 }
 0x1c6   :  { %2847 = vmatmul.mubr.msk.bf16.gmra.mrb[0].mxu1 %vm498_vm4, %v716_v27 }
 0x1c7   :  { %2854 = vmatprep.mubr.msk.bf16.mxu1 %vm498_vm4, %v3493_v52  ;;  %v3166_v52 = vld [vmem:[%s4037_s3 + $0x50] sm:$0xff]  }
 0x1ce   :  { %2855 = vmatmul.mubr.msk.bf16.vlgmr.msra.gmra.mrb[4].mxu1 %vm498_vm4, %v850_v3 }
 0x1cf   :  { %2867 = vmatpush3.bf16.msra.mxu1 %v3164_v0  ;;  %2858 = vmatprep.mubr.msk.bf16.mxu1 %vm498_vm4, %v854_v38 }
 0x1d0   :  { %2868 = vmatprep.subr.bf16.mxu1 %v3165_v49 }
 0x1d3   :  { %2869 = vmatpush3.bf16.msra.mxu1 %v3165_v49 }
 0x1d4   :  { %2882 = vmatprep.subr.bf16.mxu1 %v3166_v52 }
 0x1d6   :  { %2859 = vmatmul.mubr.msk.bf16.gmra.mrb[8].mxu1 %vm498_vm4, %v858_v28 }
 0x1d7   :  { %2862 = vmatprep.mubr.msk.bf16.mxu1 %vm498_vm4, %v867_v30 }
 0x1de   :  { %2863 = vmatmul.mubr.msk.bf16.gmra.mrb[0].mxu1 %vm498_vm4, %v866_v7 }
 0x1df   :  { %2870 = vmatprep.mubr.msk.bf16.mxu1 %vm498_vm4, %v3472_v25  ;;  %v3169_v25 = vld [vmem:[%s4037_s3 + $0x68] sm:$0xff]  }
 0x1e6   :  { %2871 = vmatmul.mubr.msk.bf16.vlgmr.msra.gmra.mrb[4].mxu1 %vm498_vm4, %v3547_v26  ;;  %v1152_v26 = vshrl.u32 %v3628_v34, 16 }
 0x1e7   :  { %2883 = vmatpush3.bf16.msra.mxu1 %v3166_v52  ;;  %2874 = vmatprep.mubr.msk.bf16.mxu1 %vm498_vm4, %v3566_v36 }
 0x1e8   :  { %2884 = vmatprep.subr.bf16.mxu1 %v3167_v13  ;;  %v1154_v36 = vor.u32 %v1152_v26, %v3655_v39 }
 0x1eb   :  { %2885 = vmatpush3.bf16.msra.mxu1 %v3167_v13 }
 0x1ec   :  { %2898 = vmatprep.subr.bf16.mxu1 %v3168_v43 }
 0x1ee   :  { %2875 = vmatmul.mubr.msk.bf16.gmra.mrb[8].mxu1 %vm498_vm4, %v3588_v22  ;;  %v3172_v22 = vld [vmem:[%s4037_s3 + $0x80] sm:$0xff]  }
 0x1ef   :  { %2878 = vmatprep.mubr.msk.bf16.mxu1 %vm498_vm4, %v3514_v16  ;;  %v3170_v16 = vld [vmem:[%s4037_s3 + $0x70] sm:$0xff]  }
 0x1f6   :  { %2879 = vmatmul.mubr.msk.bf16.gmra.mrb[0].mxu1 %vm498_vm4, %v3628_v34  ;;  %v1557_v34 = vpack.c.bf16 %v3639_v51, %v3639_v51  ;;  %v3177_v51 = vld [vmem:[%s4039_s5 + $0x38] sm:$0xff]  }
 0x1f7   :  { %2886 = vmatprep.mubr.msk.bf16.mxu1 %vm498_vm4, %v3582_v55  ;;  %v3171_v55 = vld [vmem:[%s4037_s3 + $0x78] sm:$0xff]  }
 0x1fe   :  { %2887 = vmatmul.mubr.msk.bf16.vlgmr.msra.gmra.mrb[4].mxu1 %vm498_vm4, %v3636_v44 }
 0x1ff   :  { %2899 = vmatpush3.bf16.msra.mxu1 %v3168_v43  ;;  %2890 = vmatprep.mubr.msk.bf16.mxu1 %vm498_vm4, %v3664_v6 }
 0x200   :  { %2900 = vmatprep.subr.bf16.mxu1 %v3169_v25 }
 0x203   :  { %2901 = vmatpush3.bf16.msra.mxu1 %v3169_v25 }
 0x204   :  { %2914 = vmatprep.subr.bf16.mxu1 %v3170_v16 }
 0x206   :  { %2891 = vmatmul.mubr.msk.bf16.gmra.mrb[8].mxu1 %vm498_vm4, %v3685_v37 }
 0x207   :  { %2894 = vmatprep.mubr.msk.bf16.mxu1 %vm498_vm4, %v3668_v10 }
 0x20e   :  { %2895 = vmatmul.mubr.msk.bf16.gmra.mrb[0].mxu1 %vm498_vm4, %v1154_v36 }
 0x20f   :  { %2902 = vmatprep.mubr.msk.bf16.mxu1 %vm498_vm4, %v3573_v46  ;;  %v3173_v46 = vld [vmem:[%s4037_s3 + $0x88] sm:$0xff]  }
 0x216   :  { %2903 = vmatmul.mubr.msk.bf16.vlgmr.msra.gmra.mrb[4].mxu1 %vm498_vm4, %v3673_v12 }
 0x217   :  { %2915 = vmatpush3.bf16.msra.mxu1 %v3170_v16  ;;  %2906 = vmatprep.mubr.msk.bf16.mxu1 %vm498_vm4, %v3679_v18 }
 0x218   :  { %2916 = vmatprep.subr.bf16.mxu1 %v3171_v55 }
 0x21b   :  { %2917 = vmatpush3.bf16.msra.mxu1 %v3171_v55 }
 0x21c   :  { %2930 = vmatprep.subr.bf16.mxu1 %v3172_v22 }
 0x21e   :  { %2907 = vmatmul.mubr.msk.bf16.gmra.mrb[8].mxu1 %vm498_vm4, %v3682_v31 }
 0x21f   :  { %2910 = vmatprep.mubr.msk.bf16.mxu1 %vm498_vm4, %v3690_v33 }
 0x226   :  { %2911 = vmatmul.mubr.msk.bf16.gmra.mrb[0].mxu1 %vm498_vm4, %v1291_v54 }
 0x227   :  { %2918 = vmatprep.mubr.msk.bf16.mxu1 %vm498_vm4, %v3701_v2 }
 0x22e   :  { %2919 = vmatmul.mubr.msk.bf16.vlgmr.msra.gmra.mrb[4].mxu1 %vm498_vm4, %v3711_v56 }
 0x22f   :  { %2931 = vmatpush3.bf16.msra.mxu1 %v3172_v22  ;;  %2922 = vmatprep.mubr.msk.bf16.mxu1 %vm498_vm4, %v3715_v24  ;;  %v1698_v24 = vsub.s32 0, %v1697_v58 }
 0x230   :  { %2932 = vmatprep.subr.bf16.mxu1 %v3173_v46 }
 0x231   :  { %v1699_v9 = vrot.slane %v3859_v59, %v1698_v24  ;;  %v2601_v24 = vld [vmem:[%s4038_s4] ss:$0 sm:$0xff] }
 0x233   :  { %2933 = vmatpush3.bf16.msra.mxu1 %v3173_v46 }
 0x236   :  { %2923 = vmatmul.mubr.msk.bf16.gmra.mrb[8].mxu1 %vm498_vm4, %v3718_v50 }
 0x237   :  { %2926 = vmatprep.mubr.msk.bf16.mxu1 %vm498_vm4, %v3708_v23 }
 0x23e   :  { %2927 = vmatmul.mubr.msk.bf16.gmra.mrb[0].mxu1 %vm498_vm4, %v3696_v4 }
 0x23f   :  { %2934 = vmatprep.mubr.msk.bf16.mxu1 %vm498_vm4, %v3477_v29 }
 0x246   :  { %2935 = vmatmul.mubr.msk.bf16.vlgmr.msra.gmra.mrb[4].mxu1 %vm498_vm4, %v3564_v35 }
 0x247   :  { %2938 = vmatprep.mubr.msk.bf16.mxu1 %vm498_vm4, %v3585_v57  ;;  %v3175_v57 = vld [vmem:[%s4039_s5 + $0x28] sm:$0xff]  }
 0x24e   :  { %2939 = vmatmul.mubr.msk.bf16.gmra.mrb[8].mxu1 %vm498_vm4, %v3503_v32  ;;  %v3174_v32 = vld [vmem:[%s4039_s5 + $0x20] sm:$0xff]  }
 0x24f   :  { %2942 = vmatprep.mubr.msk.bf16.mxu1 %vm498_vm4, %v3620_v15  ;;  %2947 = vmatpush3.bf16.msra.mxu0 %v3174_v32  ;;  %v3176_v15 = vld [vmem:[%s4039_s5 + $0x30] sm:$0xff]  }
 0x250   :  { %2948 = vmatprep.subr.bf16.mxu0 %v3238_v1 }
 0x253   :  { %2949 = vmatpush3.bf16.msra.mxu0 %v3175_v57  ;;  %v3179_v57 = vld [vmem:[%s4039_s5 + $0x8] sm:$0xff]  }
 0x254   :  { %2950 = vmatprep.subr.bf16.mxu0 %v3238_v1 }
 0x256   :  { %2943 = vmatmul.mubr.msk.bf16.gmra.mrb[0].mxu1 %vm498_vm4, %v1557_v34 }
 0x257   :  { %2951 = vmatpush3.bf16.msra.mxu0 %v3176_v15 }
 0x258   :  { %2952 = vmatprep.subr.bf16.mxu0 %v3238_v1 }
 0x25b   :  { %2953 = vmatpush3.bf16.msra.mxu0 %v3177_v51 }
 0x25c   :  { %2958 = vmatprep.subr.bf16.mxu0 %v3238_v1 }
 0x27b   :  { %v2808_v44 = vpop.f32.mrb[28].mxu0 }
 0x27c   :  { %v551_v39 = vpop.f32.mrb[29].mxu0 }
 0x27d   :  { %v2809_v29 = vpop.f32.mrb[30].mxu0 }
 0x27e   :  { %v554_v54 = vpop.f32.mrb[31].mxu0 }
 0x283   :  { %v2812_v6 = vpop.f32.mrb[32].mxu0 }
 0x284   :  { %v567_v35 = vpop.f32.mrb[33].mxu0 }
 0x285   :  { %v2813_v10 = vpop.f32.mrb[34].mxu0 }
 0x286   :  { %v569_v12 = vpop.f32.mrb[35].mxu0 }
 0x319   :  { %v2936_v41 = vpop.f32.mrb[4].mxu1 }
 0x31a   :  { %v3046_v18 = vadd.f32 %v2936_v41, %v2808_v44  ;;  %v1614_v31 = vpop.f32.mrb[5].mxu1  ;;  %v3180_v41 = vld [vmem:[%s4039_s5 + $0x10] sm:$0xff]  }
 0x31b   :  { %v3047_v37 = vadd.f32 %v1614_v31, %v551_v39  ;;  %v2937_v33 = vpop.f32.mrb[6].mxu1 }
 0x31c   :  { %v1852_v40 = vrot.slane %v3046_v18, 1  ;;  %v3048_v11 = vadd.f32 %v2937_v33, %v2809_v29  ;;  %v1617_v47 = vpop.f32.mrb[7].mxu1 }
 0x31d   :  { %v3049_v45 = vadd.f32 %v1617_v47, %v554_v54  ;;  %v1666_v48 = vrot.slane %v3047_v37, 1  ;;  %v3178_v54 = vld [vmem:[%s4039_s5] sm:$0xff]  }
 0x31e   :  { %v1854_v4 = vmax.f32 %v3046_v18, %v1852_v40  ;;  %v1943_v2 = vrot.slane %v3048_v11, 1  ;;  %v3183_v11 = vld [vmem:[%s4039_s5 + $0x48] sm:$0xff]  }
 0x31f   :  { %v1670_v0 = vrot.slane %v3049_v45, 1  ;;  %v1668_v62 = vmax.f32 %v3047_v37, %v1666_v48  ;;  %v3186_v48 = vld [vmem:[%s4039_s5 + $0x60] sm:$0xff]  }
 0x320   :  { %v1945_v53 = vmax.f32 %v3046_v18, %v1943_v2  ;;  %v1856_v23 = vrot.slane %v1854_v4, 7  ;;  %v3181_v18 = vld [vmem:[%s4039_s5 + $0x18] sm:$0xff]  }
 0x321   :  { %v1672_v56 = vmax.f32 %v3047_v37, %v1670_v0  ;;  %v1690_v27 = vmax.f32 %v3049_v45, %v1670_v0  ;;  %v2940_v50 = vpop.f32.mrb[8].mxu1  ;;  %v3182_v37 = vld [vmem:[%s4039_s5 + $0x40] sm:$0xff]   ;;  %v3184_v45 = vld [vmem:[%s4039_s5 + $0x50] sm:$0xff]  }
 0x322   :  { %v1947_v60 = vrot.slane %v1945_v53, 7  ;;  %v3050_v61 = vadd.f32 %v2940_v50, %v2812_v6  ;;  %v1630_v14 = vpop.f32.mrb[9].mxu1  ;;  %v3187_v53 = vld [vmem:[%s4039_s5 + $0x68] sm:$0xff]   ;;  %v3189_v50 = vld [vmem:[%s4039_s5 + $0x78] sm:$0xff]  }
 0x323   :  { %v1674_v20 = vrot.slane %v1672_v56, 7  ;;  %v1692_v63 = vrot.slane %v1690_v27, 7  ;;  %v1858_v19 = vmax.f32 %v1690_v27, %v1856_v23  ;;  %v2941_v42 = vpop.f32.mrb[10].mxu1  ;;  %v3188_v56 = vld [vmem:[%s4039_s5 + $0x70] sm:$0xff]  }
 0x324   :  { %v3861_v21 = vmax.f32 %v1854_v4, %v1947_v60  ;;  %v3051_v8 = vadd.f32 %v2941_v42, %v2813_v10  ;;  %v1632_v49 = vpop.f32.mrb[11].mxu1  ;;  %v2047_v5 = vrot.slane %v3050_v61, 1  ;;  %v3185_v4 = vld [vmem:[%s4039_s5 + $0x58] sm:$0xff]  }
 0x325   :  { %v1676_v3 = vmax.f32 %v1668_v62, %v1674_v20  ;;  %v1694_v38 = vmax.f32 %v1668_v62, %v1692_v63  ;;  %v1859_v40 = vadd.f32 %v1858_v19, %v1699_v9  ;;  %v3191_v20 = vld [vmem:[%s4039_s5 + $0x28] sm:$0xff]   ;;  %v3192_v19 = vld [vmem:[%s4039_s5 + $0x30] sm:$0xff]   ;;  %v3194_v49 = vld [vmem:[%s4039_s5] sm:$0xff]  }
 0x326   :  { %v2051_v52 = vrot.slane %v3051_v8, 1  ;;  %v2049_v43 = vmax.f32 %v3050_v61, %v2047_v5  ;;  %v1950_v23 = vadd.f32 %v3861_v21, %v3859_v59  ;;  %v3190_v61 = vld [vmem:[%s4039_s5 + $0x20] sm:$0xff]   ;;  %v3193_v21 = vld [vmem:[%s4039_s5 + $0x38] sm:$0xff]  }
 0x327   :  { %v1701_v7 = vadd.f32 %v1699_v9, %v1694_v38  ;;  %v1678_v15 = vadd.f32 %v3859_v59, %v1676_v3  ;;  %v1860_v47 = vmul.f32 0.01, %v1859_v40  ;;  %v3195_v38 = vld [vmem:[%s4039_s5 + $0x8] sm:$0xff]   ;;  %v3196_v9 = vld [vmem:[%s4039_s5 + $0x10] sm:$0xff]   ;;  %v3197_v5 = vld [vmem:[%s4039_s5 + $0x18] sm:$0xff]  }
 0x328   :  { %v2053_v28 = vmax.f32 %v3051_v8, %v2051_v52  ;;  %v1951_v27 = vmul.f32 0.01, %v1950_v23 }
 0x329   :  { %v1702_v30 = vmul.f32 0.01, %v1701_v7  ;;  %v2944_v13 = vpop.f32.mrb[0].mxu1  ;;  %v1679_v17 = vmul.f32 0.01, %v1678_v15  ;;  %v1861_v58 = vmax.f32 %v1859_v40, %v1860_v47 }
 0x32a   :  { %v2055_v25 = vrot.slane %v2053_v28, 7  ;;  %v1644_v16 = vpop.f32.mrb[1].mxu1  ;;  %v1952_v59 = vmax.f32 %v1950_v23, %v1951_v27 }
 0x32b   :  { %v1703_v26 = vmax.f32 %v1701_v7, %v1702_v30  ;;  %v2224_v36 = vrot.slane %v1644_v16, 1  ;;  %v2945_v55 = vpop.f32.mrb[2].mxu1  ;;  %v1680_v31 = vmax.f32 %v1678_v15, %v1679_v17  ;;  %v1862_v2 = vpack.c.bf16 %v1861_v58, %v1861_v58  ;;  %v3198_v7 = vld [vmem:[%s4039_s5 + $0x40] sm:$0xff]   ;;  %v3199_v30 = vld [vmem:[%s4039_s5 + $0x48] sm:$0xff]  }
 0x32c   :  { %v3864_v22 = vmax.f32 %v2049_v43, %v2055_v25  ;;  %v1647_v46 = vpop.f32.mrb[3].mxu1  ;;  %v1953_v14 = vpack.c.bf16 %v1952_v59, %v1952_v59  ;;  %v3200_v43 = vld [vmem:[%s4039_s5 + $0x50] sm:$0xff]  }
 0x32d   :  { %v1704_v34 = vpack.c.bf16 %v1703_v26, %v1703_v26  ;;  %v2226_v44 = vmax.f32 %v3051_v8, %v2224_v36  ;;  %v2227_v39 = vmax.f32 %v1644_v16, %v2224_v36  ;;  %v2317_v29 = vrot.slane %v1647_v46, 1  ;;  %v3201_v16 = vld [vmem:[%s4039_s5 + $0x58] sm:$0xff]   ;;  %v3202_v36 = vld [vmem:[%s4039_s5 + $0x60] sm:$0xff]  }
 0x32e   :  { %v1681_v33 = vpack.c.bf16 %v1680_v31, %v1680_v31  ;;  %v1873_v0 = vrot.slane %v1862_v2, 3  ;;  %v2065_v60 = vadd.f32 %v2601_v24, %v3864_v22 }
 0x32f   :  { %v1715_v6 = vrot.slane %v1704_v34, 1  ;;  %v2229_v35 = vrot.slane %v2227_v39, 7  ;;  %v2319_v10 = vmax.f32 %v1647_v46, %v2317_v29  ;;  %v3203_v46 = vld [vmem:[%s4039_s5 + $0x68] sm:$0xff]   ;;  %v3205_v29 = vld [vmem:[%s4039_s5 + $0x78] sm:$0xff]  }
 0x330   :  { %v2066_v62 = vmul.f32 0.01, %v2065_v60 }
 0x331   :  { %2955 = vmatmul.mubr.msk.bf16.vlgmr.msra.gmra.mrb[36].mxu0 %vm1740_vm8, %v1715_v6  ;;  %v3870_v12 = vmax.f32 %v2226_v44, %v2229_v35  ;;  %v2321_v32 = vrot.slane %v2319_v10, 7  ;;  %v3204_v44 = vld [vmem:[%s4039_s5 + $0x70] sm:$0xff]  }
 0x332   :  { %2959 = vmatpush3.bf16.msra.mxu0 %v3178_v54  ;;  %2966 = vmatprep.mubr.msk.bf16.mxu0 %vm3239_vm0, %v3238_v1  ;;  %v2067_v63 = vmax.f32 %v2065_v60, %v2066_v62 }
 0x333   :  { %2960 = vmatprep.subr.bf16.mxu0 %v3238_v1  ;;  %v3879_v51 = vmax.f32 %v2227_v39, %v2321_v32  ;;  %v2232_v52 = vadd.f32 %v2601_v24, %v3870_v12 }
 0x334   :  { %v2068_v42 = vpack.c.bf16 %v2067_v63, %v2067_v63 }
 0x335   :  { %v2233_v28 = vmul.f32 0.01, %v2232_v52  ;;  %v2324_v55 = vadd.f32 %v2601_v24, %v3879_v51 }
 0x336   :  { %2961 = vmatpush3.bf16.msra.mxu0 %v3179_v57  ;;  %v2086_v8 = vshrl.u32 %v2068_v42, 16  ;;  %v2407_v42 = vld [vmem:[%s4040_s6] sm:$0x1] }
 0x337   :  { %2962 = vmatprep.subr.bf16.mxu0 %v3238_v1  ;;  %v2234_v13 = vmax.f32 %v2232_v52, %v2233_v28  ;;  %v2325_v34 = vmul.f32 0.01, %v2324_v55 }
 0x338   :  { %v2088_v3 = vrot.slane %v2086_v8, 1 }
 0x339   :  { %v2235_v25 = vpack.c.bf16 %v2234_v13, %v2234_v13  ;;  %v2326_v39 = vmax.f32 %v2324_v55, %v2325_v34 }
 0x33a   :  { %2963 = vmatpush3.bf16.msra.mxu0 %v3180_v41 }
 0x33b   :  { %2964 = vmatprep.subr.bf16.mxu0 %v3238_v1  ;;  %v2245_v26 = vshrl.u32 %v2235_v25, 16  ;;  %v2327_v54 = vpack.c.bf16 %v2326_v39, %v2326_v39 }
 0x33d   :  { %v2247_v22 = vrot.slane %v2245_v26, 3  ;;  %v2337_v6 = vshrl.u32 %v2327_v54, 16 }
 0x33e   :  { %2965 = vmatpush3.bf16.msra.mxu0 %v3181_v18 }
 0x33f   :  { %2970 = vmatprep.subr.bf16.mxu0 %v3238_v1 }
 0x341   :  { %2967 = vmatmul.mubr.msk.bf16.vlgmr.msra.gmra.mrb[40].mxu0 %vm1740_vm8, %v1681_v33 }
 0x342   :  { %2971 = vmatpush3.bf16.msra.mxu0 %v3182_v37  ;;  %2978 = vmatprep.mubr.msk.bf16.mxu0 %vm3239_vm0, %v3238_v1 }
 0x343   :  { %2972 = vmatprep.subr.bf16.mxu0 %v3238_v1 }
 0x346   :  { %2973 = vmatpush3.bf16.msra.mxu0 %v3183_v11 }
 0x347   :  { %2974 = vmatprep.subr.bf16.mxu0 %v3238_v1 }
 0x34a   :  { %2975 = vmatpush3.bf16.msra.mxu0 %v3184_v45 }
 0x34b   :  { %2976 = vmatprep.subr.bf16.mxu0 %v3238_v1 }
 0x34e   :  { %2977 = vmatpush3.bf16.msra.mxu0 %v3185_v4 }
 0x34f   :  { %2982 = vmatprep.subr.bf16.mxu0 %v3238_v1 }
 0x351   :  { %2979 = vmatmul.mubr.msk.bf16.vlgmr.msra.gmra.mrb[44].mxu0 %vm1740_vm8, %v1873_v0 }
 0x352   :  { %2983 = vmatpush3.bf16.msra.mxu0 %v3186_v48  ;;  %2990 = vmatprep.mubr.msk.bf16.mxu0 %vm3239_vm0, %v3238_v1 }
 0x353   :  { %2984 = vmatprep.subr.bf16.mxu0 %v3238_v1 }
 0x356   :  { %2985 = vmatpush3.bf16.msra.mxu0 %v3187_v53 }
 0x357   :  { %2986 = vmatprep.subr.bf16.mxu0 %v3238_v1 }
 0x35a   :  { %2987 = vmatpush3.bf16.msra.mxu0 %v3188_v56 }
 0x35b   :  { %2988 = vmatprep.subr.bf16.mxu0 %v3238_v1 }
 0x35e   :  { %2989 = vmatpush3.bf16.msra.mxu0 %v3189_v50 }
 0x35f   :  { %2994 = vmatprep.subr.bf16.mxu0 %v3238_v1 }
 0x361   :  { %2991 = vmatmul.mubr.msk.bf16.vlgmr.msra.gmra.mrb[48].mxu0 %vm1740_vm8, %v1953_v14 }
 0x362   :  { %2995 = vmatpush3.bf16.msra.mxu0 %v3190_v61  ;;  %3002 = vmatprep.mubr.msk.bf16.mxu0 %vm3239_vm0, %v3238_v1 }
 0x363   :  { %2996 = vmatprep.subr.bf16.mxu0 %v3238_v1 }
 0x366   :  { %2997 = vmatpush3.bf16.msra.mxu0 %v3191_v20 }
 0x367   :  { %2998 = vmatprep.subr.bf16.mxu0 %v3238_v1 }
 0x36a   :  { %2999 = vmatpush3.bf16.msra.mxu0 %v3192_v19 }
 0x36b   :  { %3000 = vmatprep.subr.bf16.mxu0 %v3238_v1 }
 0x36e   :  { %3001 = vmatpush3.bf16.msra.mxu0 %v3193_v21 }
 0x36f   :  { %3006 = vmatprep.subr.bf16.mxu0 %v3238_v1 }
 0x371   :  { %3003 = vmatmul.mubr.msk.bf16.vlgmr.msra.gmra.mrb[52].mxu0 %vm1740_vm8, %v2088_v3 }
 0x372   :  { %3007 = vmatpush3.bf16.msra.mxu0 %v3194_v49  ;;  %3014 = vmatprep.mubr.msk.bf16.mxu0 %vm3239_vm0, %v3238_v1 }
 0x373   :  { %3008 = vmatprep.subr.bf16.mxu0 %v3238_v1 }
 0x376   :  { %3009 = vmatpush3.bf16.msra.mxu0 %v3195_v38 }
 0x377   :  { %3010 = vmatprep.subr.bf16.mxu0 %v3238_v1 }
 0x37a   :  { %3011 = vmatpush3.bf16.msra.mxu0 %v3196_v9 }
 0x37b   :  { %3012 = vmatprep.subr.bf16.mxu0 %v3238_v1 }
 0x37e   :  { %3013 = vmatpush3.bf16.msra.mxu0 %v3197_v5 }
 0x37f   :  { %3018 = vmatprep.subr.bf16.mxu0 %v3238_v1 }
 0x381   :  { %3015 = vmatmul.mubr.msk.bf16.vlgmr.msra.gmra.mrb[56].mxu0 %vm1740_vm8, %v2086_v8 }
 0x382   :  { %3019 = vmatpush3.bf16.msra.mxu0 %v3198_v7  ;;  %3026 = vmatprep.mubr.msk.bf16.mxu0 %vm3239_vm0, %v3238_v1 }
 0x383   :  { %3020 = vmatprep.subr.bf16.mxu0 %v3238_v1 }
 0x386   :  { %3021 = vmatpush3.bf16.msra.mxu0 %v3199_v30 }
 0x387   :  { %3022 = vmatprep.subr.bf16.mxu0 %v3238_v1 }
 0x38a   :  { %3023 = vmatpush3.bf16.msra.mxu0 %v3200_v43 }
 0x38b   :  { %3024 = vmatprep.subr.bf16.mxu0 %v3238_v1 }
 0x38e   :  { %3025 = vmatpush3.bf16.msra.mxu0 %v3201_v16 }
 0x38f   :  { %3030 = vmatprep.subr.bf16.mxu0 %v3238_v1 }
 0x391   :  { %3027 = vmatmul.mubr.msk.bf16.vlgmr.msra.gmra.mrb[60].mxu0 %vm1740_vm8, %v2247_v22 }
 0x392   :  { %3031 = vmatpush3.bf16.msra.mxu0 %v3202_v36  ;;  %3038 = vmatprep.mubr.msk.bf16.mxu0 %vm3239_vm0, %v3238_v1 }
 0x393   :  { %3032 = vmatprep.subr.bf16.mxu0 %v3238_v1 }
 0x396   :  { %3033 = vmatpush3.bf16.msra.mxu0 %v3203_v46 }
 0x397   :  { %3034 = vmatprep.subr.bf16.mxu0 %v3238_v1 }
 0x39a   :  { %3035 = vmatpush3.bf16.msra.mxu0 %v3204_v44 }
 0x39b   :  { %3036 = vmatprep.subr.bf16.mxu0 %v3238_v1  ;;  %v2031_v1 = vld [vmem:[%s4040_s6] sm:$0x1]  ;;  %s3243_s6 = smov [#allocation2]  }
 0x39c   :  { %s2427_s22 = sshll.u32 %s3243_s6, 4  ;;  %s2428_s22 = int_to_ptr.vmem [resolvable:$true] %s2427_s22 }
 0x39d   :  { %s3214_s23 = scalar_lea.vmem %s2428_s22, 32  ;;  %p3219_p1 = scmp.lt.s32.totalorder %s2428_s22, %s2428_s22 }
 0x39e   :  { %3037 = vmatpush3.bf16.msra.mxu0 %v3205_v29  ;;  %p3215_p0 = scmp.ne.s32.totalorder %s2428_s22, %s3214_s23  ;;  %p3220_p2 = scmp.lt.s32.totalorder %s3214_s23, %s3214_s23 }
 0x3a0   :  { %p3221_p3 = por %p3220_p2, %p3219_p1 }
 0x3a1   :  { %3039 = vmatmul.mubr.msk.bf16.vlgmr.msra.gmra.mrb[64].mxu0 %vm1740_vm8, %v2337_v6 }
 0x3a2   :  { %p3222_p4 = pnand %p3221_p3, %p3215_p0 }
 0x404   :  { %v1778_v35 = vpop.f32.mrb[36].mxu0 }
 0x405   :  { %v2956_v10 = vpop.f32.mrb[37].mxu0 }
 0x406   :  { %v1781_v12 = vpop.f32.mrb[38].mxu0 }
 0x407   :  { %v2957_v32 = vpop.f32.mrb[39].mxu0 }
 0x414   :  { %v1845_v57 = vpop.f32.mrb[40].mxu0 }
 0x415   :  { %v1846_v15 = vadd.f32 %v1845_v57, %v1778_v35  ;;  %v2968_v51 = vpop.f32.mrb[41].mxu0 }
 0x416   :  { %v1848_v41 = vpop.f32.mrb[42].mxu0 }
 0x417   :  { %v2969_v17 = vpop.f32.mrb[43].mxu0 }
 0x424   :  { %v1935_v18 = vpop.f32.mrb[44].mxu0 }
 0x425   :  { %v1941_v31 = vadd.f32 %v1935_v18, %v1846_v15  ;;  %v2980_v37 = vpop.f32.mrb[45].mxu0 }
 0x426   :  { %v1938_v33 = vpop.f32.mrb[46].mxu0 }
 0x427   :  { %v2981_v40 = vpop.f32.mrb[47].mxu0 }
 0x434   :  { %v2024_v11 = vpop.f32.mrb[48].mxu0 }
 0x435   :  { %v2030_v47 = vadd.f32 %v2024_v11, %v1941_v31  ;;  %v2992_v45 = vpop.f32.mrb[49].mxu0 }
 0x436   :  { %v2027_v58 = vpop.f32.mrb[50].mxu0 }
 0x437   :  { %v2993_v4 = vpop.f32.mrb[51].mxu0  ;;  %v2032_v2 = vadd.f32 %v2031_v1, %v2030_v47 }
 0x439   :  { %v2034_v48 = vsel %vm2033_vm9, %v2032_v2, -inf }
 0x43a   :  { %2035 = vmax.xlane.f32.xlu1 %v2034_v48 }
 0x444   :  { %v2150_v0 = vpop.f32.mrb[52].mxu0 }
 0x445   :  { %v3004_v53 = vpop.f32.mrb[53].mxu0 }
 0x446   :  { %v2153_v23 = vpop.f32.mrb[54].mxu0 }
 0x447   :  { %v3005_v56 = vpop.f32.mrb[55].mxu0 }
 0x454   :  { %v2217_v27 = vpop.f32.mrb[56].mxu0 }
 0x455   :  { %v2218_v24 = vadd.f32 %v2217_v27, %v2150_v0  ;;  %v3016_v50 = vpop.f32.mrb[57].mxu0 }
 0x456   :  { %v2220_v59 = vpop.f32.mrb[58].mxu0 }
 0x457   :  { %v3017_v60 = vpop.f32.mrb[59].mxu0 }
 0x464   :  { %v2309_v61 = vpop.f32.mrb[60].mxu0 }
 0x465   :  { %v2315_v14 = vadd.f32 %v2309_v61, %v2218_v24  ;;  %v3028_v62 = vpop.f32.mrb[61].mxu0 }
 0x466   :  { %v2312_v20 = vpop.f32.mrb[62].mxu0 }
 0x467   :  { %v3029_v63 = vpop.f32.mrb[63].mxu0 }
 0x474   :  { %v2400_v19 = vpop.f32.mrb[64].mxu0 }
 0x475   :  { %v2406_v21 = vadd.f32 %v2400_v19, %v2315_v14  ;;  %v3040_v8 = vpop.f32.mrb[65].mxu0 }
 0x476   :  { %v2403_v49 = vpop.f32.mrb[66].mxu0 }
 0x477   :  { %v3041_v3 = vpop.f32.mrb[67].mxu0  ;;  %v2408_v38 = vadd.f32 %v2407_v42, %v2406_v21 }
 0x479   :  { %v2409_v9 = vsel %vm2033_vm9, %v2408_v38, -inf }
 0x47a   :  { %2410 = vmax.xlane.f32.xlu0 %v2409_v9 }
 0x4c7   :  { %v2036_v5 = vpop.xlane.xlu1 %2035 }
 0x4c8   :  { %v2037_v52 = vsub.f32 %v2032_v2, %v2036_v5 }
 0x4ca   :  { %v2038_v7 = vmul.f32 1.442695, %v2037_v52 }
 0x4cc   :  { %3206 = vpow2.f32 %v2038_v7 }
 0x4d6   :  { %v3207_v28 = vpop.eup %3206 }
 0x4d7   :  { %v2040_v30 = vsel %vm2033_vm9, %v3207_v28, 0.0 }
 0x4d8   :  { %2041 = vadd.xlane.f32.xlu0 %v2040_v30 }
 0x507   :  { %v2411_v13 = vpop.xlane.xlu0 %2410 }
 0x508   :  { %v2412_v43 = vsub.f32 %v2408_v38, %v2411_v13 }
 0x50a   :  { %v2413_v25 = vmul.f32 1.442695, %v2412_v43 }
 0x50c   :  { %3208 = vpow2.f32 %v2413_v25 }
 0x516   :  { %v3209_v16 = vpop.eup %3208 }
 0x517   :  { %v2415_v26 = vsel %vm2033_vm9, %v3209_v16, 0.0 }
 0x518   :  { %2416 = vadd.xlane.f32.xlu1 %v2415_v26 }
 0x565   :  { %v2042_v36 = vpop.xlane.xlu0 %2041 }
 0x566   :  { %3210 = vrcp.f32 %v2042_v36 }
 0x570   :  { %v3211_v55 = vpop.eup %3210 }
 0x571   :  { %v2044_v22 = vmul.f32 %v3211_v55, %v3207_v28 }
 0x573   :  { %2045 = vst [vmem:[#allocation2] sm:$0x1] %v2044_v22 }
 0x5a5   :  { %v2417_v46 = vpop.xlane.xlu1 %2416 }
 0x5a6   :  { %3212 = vrcp.f32 %v2417_v46 }
 0x5b0   :  { %v3213_v34 = vpop.eup %3212 }
 0x5b1   :  { %v2419_v44 = vmul.f32 %v3213_v34, %v3209_v16 }
 0x5b3   :  { %2420 = vst [vmem:[#allocation2 + $0x1] sm:$0x1] %v2419_v44 }
 0x5b4   :  { %3225 = shalt.err (!%p3222_p4)
}
 0x5b5   :  { %s3226_s26 = scalar_lea.hbm %s4041_s7, 32 }
 0x5b6   :  { %p3227_p5 = scmp.ne.s32.totalorder %s4041_s7, %s3226_s26  ;;  %p3230_p6 = scmp.lt.u32.totalorder %s3226_s26, %s4041_s7 }
 0x5b8   :  { %p3232_p7 = pnand %p3230_p6, %p3227_p5 }
 0x5ba   :  { %3235 = shalt.err (!%p3232_p7)
}
 0x5bb   :  { %2430 = dma.vmem_to_hbm [thread:$0]  %s2428_s22, 32, %s4041_s7, [#allocation3]  }
 0x5bc   :  { %3236 = dma.done.wait [#allocation3], 32  }
 0x5bd   :  { %3237 = vsyncadd [#allocation3], 4294967264 }
 0x5be   :  { %2434 = vsyncpa [#allocation3], 1 }

</bundles_post_ra>
